<compile_context>
chip_gen: v7x
topology: tpu7x:2x2x1
jax: 0.10.0
libtpu: 0.0.40
codegen_flags: <defaults>
</compile_context>

<pallas_src>
import jax
import jax.numpy as jnp
from jax import lax
from jax.experimental import pallas as pl
from jax.experimental.pallas import tpu as pltpu

# Matmul operand dtype (accumulation is always f32).  float32 = exact PyTorch
# semantics; bfloat16 = ~2x MXU throughput / half the resident weight bytes.
MATMUL_DTYPE = jnp.float32


def _pick_time_chunk(B, T, G, bytes_cap=2 * 1024 * 1024):
    """Largest multiple-of-8 divisor Tc of T such that B*Tc reaches ~256 rows
    (one full 256x256 MXU pass) while the per-chunk f32 gate scratch
    (Tc*B*G*4 bytes) stays under bytes_cap.  Falls back to Tc=T when T has no
    multiple-of-8 divisor (watch VMEM for very large T in that case)."""
    best = None
    for tc in range(8, T + 1, 8):
        if T % tc:
            continue
        if best is not None and tc * B * G * 4 > bytes_cap:
            break
        best = tc
        if B * tc >= 256:
            break
    return best if best is not None else T


# ----------------------------------------------------------------------------
# Shared per-chunk LSTM recurrence.  gx_sc holds this chunk's input-projection
# gate pre-activations (Tc, B, 4H) in VMEM; h/c persist in VMEM scratch across
# the (serial) time-chunk grid.  Gate ordering follows PyTorch: [i, f, g, o].
# ----------------------------------------------------------------------------
def _chunk_recurrence(out_ref, hn_ref, cn_ref, h_sc, c_sc, gx_sc, whh_ref):
    cidx = pl.program_id(0)
    Tc, B, H = out_ref.shape

    @pl.when(cidx == 0)
    def _():
        h_sc[...] = jnp.zeros_like(h_sc)
        c_sc[...] = jnp.zeros_like(c_sc)

    whh = whh_ref[...].astype(MATMUL_DTYPE)                 # (H, 4H)
    U = 8 if Tc % 8 == 0 else Tc                            # static-unroll window

    def sub_chunk(si, carry):
        h, c = carry
        base = pl.multiple_of(si * U, U)
        g_blk = gx_sc[pl.ds(base, U), :, :]                 # (U, B, 4H) f32
        hs = []
        for u in range(U):                                  # statically unrolled
            gates = g_blk[u] + jnp.dot(h.astype(MATMUL_DTYPE), whh,
                                       preferred_element_type=jnp.float32)
            sg = jax.nn.sigmoid(gates)                      # one EUP pass, (B,4H)
            tg = jnp.tanh(gates)                            # one EUP pass, (B,4H)
            i_g = sg[:, 0 * H:1 * H]
            f_g = sg[:, 1 * H:2 * H]
            g_g = tg[:, 2 * H:3 * H]
            o_g = sg[:, 3 * H:4 * H]
            c = f_g * c + i_g * g_g
            h = o_g * jnp.tanh(c)
            hs.append(h)
        # One aligned (U, B, H) store per sub-chunk (time-major layout) instead
        # of U per-step sublane scatters.
        out_ref[pl.ds(base, U), :, :] = jnp.stack(hs, axis=0).astype(out_ref.dtype)
        return (h, c)

    h, c = lax.fori_loop(0, Tc // U, sub_chunk, (h_sc[...], c_sc[...]))
    h_sc[...] = h
    c_sc[...] = c

    # h_n / c_n use constant-index out BlockSpecs: the blocks stay resident in
    # VMEM across all (serial) time chunks and are written back to HBM only at
    # the end, so storing on the last chunk is sufficient.
    @pl.when(cidx == pl.num_programs(0) - 1)
    def _():
        hn_ref[...] = h
        cn_ref[...] = c


# ----------------------------------------------------------------------------
# Layer 0 kernel: fused embedding lookup + input projection + recurrence.
# ----------------------------------------------------------------------------
def _lstm_layer0_kernel(ids_ref, tab_ref, wih_ref, whh_ref, b_ref,
                        out_ref, hn_ref, cn_ref,
                        h_sc, c_sc, gx_sc, ptab_sc):
    cidx = pl.program_id(0)
    Tc, B = ids_ref.shape
    V = tab_ref.shape[0]
    G = gx_sc.shape[-1]

    @pl.when(cidx == 0)
    def _():
        # Fold the embedding table through the input projection once:
        #   ptab[v] = table[v] @ W_ih^T + (b_ih + b_hh)
        ptab_sc[...] = (jnp.dot(tab_ref[...].astype(MATMUL_DTYPE),
                                wih_ref[...].astype(MATMUL_DTYPE),
                                preferred_element_type=jnp.float32)
                        + b_ref[...])

    # Embedding gather for the whole chunk as a one-hot MXU matmul (table in
    # VMEM; no per-token DMAs).  Out-of-range ids yield a zero row.
    ids = ids_ref[...]                                            # (Tc, B) int32
    onehot = (ids[:, :, None] ==
              lax.broadcasted_iota(jnp.int32, (Tc, B, V), 2)).astype(MATMUL_DTYPE)
    gx = jnp.dot(onehot.reshape(Tc * B, V),
                 ptab_sc[...].astype(MATMUL_DTYPE),
                 preferred_element_type=jnp.float32)              # (Tc*B, 4H)
    gx_sc[...] = gx.reshape(Tc, B, G)

    _chunk_recurrence(out_ref, hn_ref, cn_ref, h_sc, c_sc, gx_sc, whh_ref)


# ----------------------------------------------------------------------------
# Layer >= 1 kernel: fused input projection (from the previous layer's
# time-major output) + recurrence.
# ----------------------------------------------------------------------------
def _lstm_layer_kernel(x_ref, wih_ref, whh_ref, b_ref,
                       out_ref, hn_ref, cn_ref,
                       h_sc, c_sc, gx_sc):
    Tc, B, Hin = x_ref.shape
    G = gx_sc.shape[-1]

    x = x_ref[...].astype(MATMUL_DTYPE).reshape(Tc * B, Hin)      # lane dim kept
    gx = (jnp.dot(x, wih_ref[...].astype(MATMUL_DTYPE),
                  preferred_element_type=jnp.float32) + b_ref[...])
    gx_sc[...] = gx.reshape(Tc, B, G)

    _chunk_recurrence(out_ref, hn_ref, cn_ref, h_sc, c_sc, gx_sc, whh_ref)


# ----------------------------------------------------------------------------
# pallas_call wrappers (one call per LSTM layer).
# ----------------------------------------------------------------------------
def _layer_weights(layer):
    G = layer["w_ih"].shape[0]
    wih_t = jnp.transpose(layer["w_ih"]).astype(MATMUL_DTYPE)     # (in, 4H)
    whh_t = jnp.transpose(layer["w_hh"]).astype(MATMUL_DTYPE)     # (H, 4H)
    bias = (layer["b_ih"] + layer["b_hh"]).reshape(1, G).astype(jnp.float32)
    return wih_t, whh_t, bias


def lstm_layer0(ids_tm, table, layer, Tc):
    """ids_tm: (T, B) int32 time-major token ids. Returns time-major output
    (T, B, H) plus (h_n, c_n) each (B, H)."""
    T, B = ids_tm.shape
    V, E = table.shape
    H = layer["w_hh"].shape[1]
    G = 4 * H
    wih_t, whh_t, bias = _layer_weights(layer)
    return pl.pallas_call(
        _lstm_layer0_kernel,
        out_shape=(jax.ShapeDtypeStruct((T, B, H), jnp.float32),
                   jax.ShapeDtypeStruct((B, H), jnp.float32),
                   jax.ShapeDtypeStruct((B, H), jnp.float32)),
        grid=(T // Tc,),
        in_specs=[pl.BlockSpec((Tc, B), lambda c: (c, 0)),        # ids (time-major)
                  pl.BlockSpec((V, E), lambda c: (0, 0)),         # embedding table
                  pl.BlockSpec((E, G), lambda c: (0, 0)),         # W_ih^T
                  pl.BlockSpec((H, G), lambda c: (0, 0)),         # W_hh^T
                  pl.BlockSpec((1, G), lambda c: (0, 0))],        # b_ih + b_hh
        out_specs=(pl.BlockSpec((Tc, B, H), lambda c: (c, 0, 0)),
                   pl.BlockSpec((B, H), lambda c: (0, 0)),
                   pl.BlockSpec((B, H), lambda c: (0, 0))),
        scratch_shapes=[pltpu.VMEM((B, H), jnp.float32),          # h
                        pltpu.VMEM((B, H), jnp.float32),          # c
                        pltpu.VMEM((Tc, B, G), jnp.float32),      # chunk gates
                        pltpu.VMEM((V, G), jnp.float32)],         # folded table
        compiler_params=pltpu.CompilerParams(
            dimension_semantics=("arbitrary",)),                  # serial time
    )(ids_tm, table, wih_t, whh_t, bias)


def lstm_layer(x_tm, layer, Tc):
    """x_tm: (T, B, Hin) f32 time-major previous-layer output."""
    T, B, Hin = x_tm.shape
    H = layer["w_hh"].shape[1]
    G = 4 * H
    wih_t, whh_t, bias = _layer_weights(layer)
    return pl.pallas_call(
        _lstm_layer_kernel,
        out_shape=(jax.ShapeDtypeStruct((T, B, H), jnp.float32),
                   jax.ShapeDtypeStruct((B, H), jnp.float32),
                   jax.ShapeDtypeStruct((B, H), jnp.float32)),
        grid=(T // Tc,),
        in_specs=[pl.BlockSpec((Tc, B, Hin), lambda c: (c, 0, 0)),
                  pl.BlockSpec((Hin, G), lambda c: (0, 0)),
                  pl.BlockSpec((H, G), lambda c: (0, 0)),
                  pl.BlockSpec((1, G), lambda c: (0, 0))],
        out_specs=(pl.BlockSpec((Tc, B, H), lambda c: (c, 0, 0)),
                   pl.BlockSpec((B, H), lambda c: (0, 0)),
                   pl.BlockSpec((B, H), lambda c: (0, 0))),
        scratch_shapes=[pltpu.VMEM((B, H), jnp.float32),
                        pltpu.VMEM((B, H), jnp.float32),
                        pltpu.VMEM((Tc, B, G), jnp.float32)],
        compiler_params=pltpu.CompilerParams(
            dimension_semantics=("arbitrary",)),
    )(x_tm, wih_t, whh_t, bias)


# ----------------------------------------------------------------------------
# Encoder: embedding + (possibly stacked) LSTM.
# ----------------------------------------------------------------------------
def init_encoder_params(key, input_dim, embedding_dim, hidden_dim, num_layers=1):
    keys = jax.random.split(key, 1 + 4 * num_layers)
    params = {"embedding": jax.random.normal(
        keys[0], (input_dim, embedding_dim), jnp.float32)}
    k = 1.0 / jnp.sqrt(hidden_dim)
    layers = []
    for l in range(num_layers):
        in_sz = embedding_dim if l == 0 else hidden_dim
        kk = keys[1 + 4 * l: 1 + 4 * (l + 1)]
        layers.append({
            "w_ih": jax.random.uniform(kk[0], (4 * hidden_dim, in_sz),
                                       jnp.float32, -k, k),
            "w_hh": jax.random.uniform(kk[1], (4 * hidden_dim, hidden_dim),
                                       jnp.float32, -k, k),
            "b_ih": jax.random.uniform(kk[2], (4 * hidden_dim,),
                                       jnp.float32, -k, k),
            "b_hh": jax.random.uniform(kk[3], (4 * hidden_dim,),
                                       jnp.float32, -k, k),
        })
    params["lstm"] = layers
    return params


@jax.jit
def encoder_forward(params, src):
    B, T = src.shape
    layers = params["lstm"]
    H = layers[0]["w_hh"].shape[1]
    Tc = _pick_time_chunk(B, T, 4 * H)

    ids_tm = jnp.transpose(src).astype(jnp.int32)           # (T, B) time-major

    # Layer 0: fused embedding + input projection + recurrence.
    x, h_n, c_n = lstm_layer0(ids_tm, params["embedding"], layers[0], Tc)
    h_list, c_list = [h_n], [c_n]

    # Deeper layers consume the previous layer's time-major output directly.
    for layer in layers[1:]:
        x, h_n, c_n = lstm_layer(x, layer, Tc)
        h_list.append(h_n)
        c_list.append(c_n)

    outputs = jnp.transpose(x, (1, 0, 2))                    # batch-first (B,T,H)
    hidden = (jnp.stack(h_list, axis=0), jnp.stack(c_list, axis=0))
    return outputs, hidden


# ----------------------------------------------------------------------------
# Pure-JAX f32 reference (PyTorch LSTM semantics) for correctness checking.
# ----------------------------------------------------------------------------
def _ref_lstm_layer(x, layer):
    B, T, _ = x.shape
    H = layer["w_hh"].shape[1]
    gih = (jnp.einsum("bti,gi->btg", x, layer["w_ih"])
           + layer["b_ih"] + layer["b_hh"])                   # (B, T, 4H)

    def step(carry, g_t):
        h, c = carry
        gates = g_t + h @ layer["w_hh"].T
        i, f, g, o = jnp.split(gates, 4, axis=-1)
        c = jax.nn.sigmoid(f) * c + jax.nn.sigmoid(i) * jnp.tanh(g)
        h = jax.nn.sigmoid(o) * jnp.tanh(c)
        return (h, c), h

    init = (jnp.zeros((B, H), jnp.float32), jnp.zeros((B, H), jnp.float32))
    (h_n, c_n), out_tm = lax.scan(step, init, jnp.transpose(gih, (1, 0, 2)))
    return jnp.transpose(out_tm, (1, 0, 2)), h_n, c_n


def _ref_encoder(params, src):
    x = params["embedding"][src]
    h_list, c_list = [], []
    for layer in params["lstm"]:
        x, h_n, c_n = _ref_lstm_layer(x, layer)
        h_list.append(h_n)
        c_list.append(c_n)
    return x, (jnp.stack(h_list, 0), jnp.stack(c_list, 0))


if __name__ == "__main__":
    INPUT_DIM = 16       # vocab size == nn.LSTM input_size in the PyTorch module
    EMBED_DIM = 16       # must equal INPUT_DIM (module feeds embeddings to LSTM)
    HIDDEN_DIM = 32
    NUM_LAYERS = 2
    B, T = 8, 64         # Tc picker -> 32-step chunks, 2 serial grid steps

    key = jax.random.PRNGKey(0)
    k_param, k_src = jax.random.split(key)
    params = init_encoder_params(k_param, INPUT_DIM, EMBED_DIM, HIDDEN_DIM,
                                 NUM_LAYERS)
    src = jax.random.randint(k_src, (B, T), 0, INPUT_DIM, dtype=jnp.int32)

    outputs, (h_n, c_n) = encoder_forward(params, src)
    outputs = jax.block_until_ready(outputs)
    h_n = jax.block_until_ready(h_n)
    c_n = jax.block_until_ready(c_n)

    assert outputs.shape == (B, T, HIDDEN_DIM)
    assert h_n.shape == (NUM_LAYERS, B, HIDDEN_DIM)
    assert c_n.shape == (NUM_LAYERS, B, HIDDEN_DIM)

    ref_out, (ref_h, ref_c) = _ref_encoder(params, src)
    assert jnp.allclose(outputs, ref_out, atol=1e-3, rtol=1e-3), \
        float(jnp.max(jnp.abs(outputs - ref_out)))
    assert jnp.allclose(h_n, ref_h, atol=1e-3, rtol=1e-3)
    assert jnp.allclose(c_n, ref_c, atol=1e-3, rtol=1e-3)

    print("KERNEL_OK")
</pallas_src>

<mosaic_0001>
module attributes {stable_mosaic.version = 11 : i64} {
  func.func @_lstm_layer_kernel(%arg0: i32, %arg1: memref<32x8x32xf32, #tpu.memory_space<vmem>>, %arg2: memref<32x128xf32, #tpu.memory_space<vmem>>, %arg3: memref<32x128xf32, #tpu.memory_space<vmem>>, %arg4: memref<1x128xf32, #tpu.memory_space<vmem>>, %arg5: memref<32x8x32xf32, #tpu.memory_space<vmem>>, %arg6: memref<8x32xf32, #tpu.memory_space<vmem>>, %arg7: memref<8x32xf32, #tpu.memory_space<vmem>>, %arg8: memref<8x32xf32, #tpu.memory_space<vmem>>, %arg9: memref<8x32xf32, #tpu.memory_space<vmem>>, %arg10: memref<32x8x128xf32, #tpu.memory_space<vmem>>) attributes {dimension_semantics = [#tpu.dimension_semantics<arbitrary>], iteration_bounds = array<i64: 2>, scalar_prefetch = 0 : i64, scratch_operands = 3 : i64, tpu.core_type = #tpu.core_type<tc>, window_params = [{transform_indices = @transform_0, window_bounds = array<i64: 32, 8, 32>}, {pipeline_mode = #tpu.pipeline_mode<synchronous>, transform_indices = @transform_1, window_bounds = array<i64: 32, 128>}, {pipeline_mode = #tpu.pipeline_mode<synchronous>, transform_indices = @transform_2, window_bounds = array<i64: 32, 128>}, {pipeline_mode = #tpu.pipeline_mode<synchronous>, transform_indices = @transform_3, window_bounds = array<i64: 1, 128>}, {transform_indices = @transform_4, window_bounds = array<i64: 32, 8, 32>}, {pipeline_mode = #tpu.pipeline_mode<synchronous>, transform_indices = @transform_5, window_bounds = array<i64: 8, 32>}, {pipeline_mode = #tpu.pipeline_mode<synchronous>, transform_indices = @transform_6, window_bounds = array<i64: 8, 32>}]} {
    %c0 = arith.constant 0 : index
    %c0_0 = arith.constant 0 : index
    %c0_1 = arith.constant 0 : index
    %0 = vector.load %arg1[%c0, %c0_0, %c0_1] : memref<32x8x32xf32, #tpu.memory_space<vmem>>, vector<32x8x32xf32>
    %1 = vector.shape_cast %0 : vector<32x8x32xf32> to vector<256x32xf32>
    %c0_2 = arith.constant 0 : index
    %c0_3 = arith.constant 0 : index
    %2 = vector.load %arg2[%c0_2, %c0_3] : memref<32x128xf32, #tpu.memory_space<vmem>>, vector<32x128xf32>
    %cst = arith.constant dense<0.000000e+00> : vector<256x128xf32>
    %3 = tpu.matmul %1, %2, %cst {dimension_numbers = #tpu.dot_dimension_numbers<[1], [0], [0], [1], [0, 0, 1, 1], [], []>} : vector<256x32xf32>, vector<32x128xf32>, vector<256x128xf32> -> vector<256x128xf32>
    %c0_4 = arith.constant 0 : index
    %c0_5 = arith.constant 0 : index
    %4 = vector.load %arg4[%c0_4, %c0_5] : memref<1x128xf32, #tpu.memory_space<vmem>>, vector<1x128xf32>
    %5 = vector.broadcast %4 : vector<1x128xf32> to vector<256x128xf32>
    %6 = arith.addf %3, %5 : vector<256x128xf32>
    %7 = vector.shape_cast %6 : vector<256x128xf32> to vector<32x8x128xf32>
    %c0_6 = arith.constant 0 : index
    %c0_7 = arith.constant 0 : index
    %c0_8 = arith.constant 0 : index
    %8 = vector.load %arg10[%c0_6, %c0_7, %c0_8] : memref<32x8x128xf32, #tpu.memory_space<vmem>>, vector<32x8x128xf32>
    tpu.vector_store %arg10[%c0_6, %c0_7, %c0_8], %7 {strides = array<i32>} : memref<32x8x128xf32, #tpu.memory_space<vmem>>, vector<32x8x128xf32>,
    %c0_i32 = arith.constant 0 : i32
    %9 = arith.cmpi eq, %arg0, %c0_i32 : i32
    %10 = arith.extui %9 : i1 to i32
    %c0_i32_9 = arith.constant 0 : i32
    %11 = arith.cmpi ne, %10, %c0_i32_9 : i32
    scf.if %11 {
      %cst_24 = arith.constant 0.000000e+00 : f32
      %22 = vector.broadcast %cst_24 : f32 to vector<8x32xf32>
      %c0_25 = arith.constant 0 : index
      %c0_26 = arith.constant 0 : index
      %23 = vector.load %arg8[%c0_25, %c0_26] : memref<8x32xf32, #tpu.memory_space<vmem>>, vector<8x32xf32>
      tpu.vector_store %arg8[%c0_25, %c0_26], %22 {strides = array<i32>} : memref<8x32xf32, #tpu.memory_space<vmem>>, vector<8x32xf32>,
      %cst_27 = arith.constant 0.000000e+00 : f32
      %24 = vector.broadcast %cst_27 : f32 to vector<8x32xf32>
      %c0_28 = arith.constant 0 : index
      %c0_29 = arith.constant 0 : index
      %25 = vector.load %arg9[%c0_28, %c0_29] : memref<8x32xf32, #tpu.memory_space<vmem>>, vector<8x32xf32>
      tpu.vector_store %arg9[%c0_28, %c0_29], %24 {strides = array<i32>} : memref<8x32xf32, #tpu.memory_space<vmem>>, vector<8x32xf32>,
    } else {
    }
    %c0_10 = arith.constant 0 : index
    %c0_11 = arith.constant 0 : index
    %12 = vector.load %arg3[%c0_10, %c0_11] : memref<32x128xf32, #tpu.memory_space<vmem>>, vector<32x128xf32>
    %c0_12 = arith.constant 0 : index
    %c0_13 = arith.constant 0 : index
    %13 = vector.load %arg8[%c0_12, %c0_13] : memref<8x32xf32, #tpu.memory_space<vmem>>, vector<8x32xf32>
    %c0_14 = arith.constant 0 : index
    %c0_15 = arith.constant 0 : index
    %14 = vector.load %arg9[%c0_14, %c0_15] : memref<8x32xf32, #tpu.memory_space<vmem>>, vector<8x32xf32>
    %c0_i32_16 = arith.constant 0 : i32
    %c4_i32 = arith.constant 4 : i32
    %15 = arith.addi %c0_i32_16, %c4_i32 : i32
    %c1_i32 = arith.constant 1 : i32
    %16:2 = scf.for %arg11 = %c0_i32_16 to %15 step %c1_i32 iter_args(%arg12 = %13, %arg13 = %14) -> (vector<8x32xf32>, vector<8x32xf32>)  : i32 {
      %c8_i32 = arith.constant 8 : i32
      %22 = arith.muli %arg11, %c8_i32 : i32
      %23 = tpu.assume_multiple %22, 8 : i32
      %24 = arith.index_cast %23 : i32 to index
      %c0_24 = arith.constant 0 : index
      %c0_25 = arith.constant 0 : index
      %25 = vector.load %arg10[%24, %c0_24, %c0_25] : memref<32x8x128xf32, #tpu.memory_space<vmem>>, vector<8x8x128xf32>
      %26 = vector.extract_strided_slice %25 {offsets = [0, 0, 0], sizes = [1, 8, 128], strides = [1, 1, 1]} : vector<8x8x128xf32> to vector<1x8x128xf32>
      %27 = vector.shape_cast %26 : vector<1x8x128xf32> to vector<8x128xf32>
      %cst_26 = arith.constant dense<0.000000e+00> : vector<8x128xf32>
      %28 = tpu.matmul %arg12, %12, %cst_26 {dimension_numbers = #tpu.dot_dimension_numbers<[1], [0], [0], [1], [0, 0, 1, 1], [], []>} : vector<8x32xf32>, vector<32x128xf32>, vector<8x128xf32> -> vector<8x128xf32>
      %29 = arith.addf %27, %28 : vector<8x128xf32>
      %30 = arith.negf %29 : vector<8x128xf32>
      %31 = math.exp %30 : vector<8x128xf32>
      %cst_27 = arith.constant 1.000000e+00 : f32
      %32 = vector.broadcast %cst_27 : f32 to vector<8x128xf32>
      %33 = arith.addf %32, %31 : vector<8x128xf32>
      %34 = arith.divf %32, %33 : vector<8x128xf32>
      %35 = math.tanh %29 : vector<8x128xf32>
      %36 = vector.extract_strided_slice %34 {offsets = [0, 0], sizes = [8, 32], strides = [1, 1]} : vector<8x128xf32> to vector<8x32xf32>
      %37 = vector.extract_strided_slice %34 {offsets = [0, 32], sizes = [8, 32], strides = [1, 1]} : vector<8x128xf32> to vector<8x32xf32>
      %38 = vector.extract_strided_slice %35 {offsets = [0, 64], sizes = [8, 32], strides = [1, 1]} : vector<8x128xf32> to vector<8x32xf32>
      %39 = vector.extract_strided_slice %34 {offsets = [0, 96], sizes = [8, 32], strides = [1, 1]} : vector<8x128xf32> to vector<8x32xf32>
      %40 = arith.mulf %37, %arg13 : vector<8x32xf32>
      %41 = arith.mulf %36, %38 : vector<8x32xf32>
      %42 = arith.addf %40, %41 : vector<8x32xf32>
      %43 = math.tanh %42 : vector<8x32xf32>
      %44 = arith.mulf %39, %43 : vector<8x32xf32>
      %45 = vector.extract_strided_slice %25 {offsets = [1, 0, 0], sizes = [1, 8, 128], strides = [1, 1, 1]} : vector<8x8x128xf32> to vector<1x8x128xf32>
      %46 = vector.shape_cast %45 : vector<1x8x128xf32> to vector<8x128xf32>
      %cst_28 = arith.constant dense<0.000000e+00> : vector<8x128xf32>
      %47 = tpu.matmul %44, %12, %cst_28 {dimension_numbers = #tpu.dot_dimension_numbers<[1], [0], [0], [1], [0, 0, 1, 1], [], []>} : vector<8x32xf32>, vector<32x128xf32>, vector<8x128xf32> -> vector<8x128xf32>
      %48 = arith.addf %46, %47 : vector<8x128xf32>
      %49 = arith.negf %48 : vector<8x128xf32>
      %50 = math.exp %49 : vector<8x128xf32>
      %cst_29 = arith.constant 1.000000e+00 : f32
      %51 = vector.broadcast %cst_29 : f32 to vector<8x128xf32>
      %52 = arith.addf %51, %50 : vector<8x128xf32>
      %53 = arith.divf %51, %52 : vector<8x128xf32>
      %54 = math.tanh %48 : vector<8x128xf32>
      %55 = vector.extract_strided_slice %53 {offsets = [0, 0], sizes = [8, 32], strides = [1, 1]} : vector<8x128xf32> to vector<8x32xf32>
      %56 = vector.extract_strided_slice %53 {offsets = [0, 32], sizes = [8, 32], strides = [1, 1]} : vector<8x128xf32> to vector<8x32xf32>
      %57 = vector.extract_strided_slice %54 {offsets = [0, 64], sizes = [8, 32], strides = [1, 1]} : vector<8x128xf32> to vector<8x32xf32>
      %58 = vector.extract_strided_slice %53 {offsets = [0, 96], sizes = [8, 32], strides = [1, 1]} : vector<8x128xf32> to vector<8x32xf32>
      %59 = arith.mulf %56, %42 : vector<8x32xf32>
      %60 = arith.mulf %55, %57 : vector<8x32xf32>
      %61 = arith.addf %59, %60 : vector<8x32xf32>
      %62 = math.tanh %61 : vector<8x32xf32>
      %63 = arith.mulf %58, %62 : vector<8x32xf32>
      %64 = vector.extract_strided_slice %25 {offsets = [2, 0, 0], sizes = [1, 8, 128], strides = [1, 1, 1]} : vector<8x8x128xf32> to vector<1x8x128xf32>
      %65 = vector.shape_cast %64 : vector<1x8x128xf32> to vector<8x128xf32>
      %cst_30 = arith.constant dense<0.000000e+00> : vector<8x128xf32>
      %66 = tpu.matmul %63, %12, %cst_30 {dimension_numbers = #tpu.dot_dimension_numbers<[1], [0], [0], [1], [0, 0, 1, 1], [], []>} : vector<8x32xf32>, vector<32x128xf32>, vector<8x128xf32> -> vector<8x128xf32>
      %67 = arith.addf %65, %66 : vector<8x128xf32>
      %68 = arith.negf %67 : vector<8x128xf32>
      %69 = math.exp %68 : vector<8x128xf32>
      %cst_31 = arith.constant 1.000000e+00 : f32
      %70 = vector.broadcast %cst_31 : f32 to vector<8x128xf32>
      %71 = arith.addf %70, %69 : vector<8x128xf32>
      %72 = arith.divf %70, %71 : vector<8x128xf32>
      %73 = math.tanh %67 : vector<8x128xf32>
      %74 = vector.extract_strided_slice %72 {offsets = [0, 0], sizes = [8, 32], strides = [1, 1]} : vector<8x128xf32> to vector<8x32xf32>
      %75 = vector.extract_strided_slice %72 {offsets = [0, 32], sizes = [8, 32], strides = [1, 1]} : vector<8x128xf32> to vector<8x32xf32>
      %76 = vector.extract_strided_slice %73 {offsets = [0, 64], sizes = [8, 32], strides = [1, 1]} : vector<8x128xf32> to vector<8x32xf32>
      %77 = vector.extract_strided_slice %72 {offsets = [0, 96], sizes = [8, 32], strides = [1, 1]} : vector<8x128xf32> to vector<8x32xf32>
      %78 = arith.mulf %75, %61 : vector<8x32xf32>
      %79 = arith.mulf %74, %76 : vector<8x32xf32>
      %80 = arith.addf %78, %79 : vector<8x32xf32>
      %81 = math.tanh %80 : vector<8x32xf32>
      %82 = arith.mulf %77, %81 : vector<8x32xf32>
      %83 = vector.extract_strided_slice %25 {offsets = [3, 0, 0], sizes = [1, 8, 128], strides = [1, 1, 1]} : vector<8x8x128xf32> to vector<1x8x128xf32>
      %84 = vector.shape_cast %83 : vector<1x8x128xf32> to vector<8x128xf32>
      %cst_32 = arith.constant dense<0.000000e+00> : vector<8x128xf32>
      %85 = tpu.matmul %82, %12, %cst_32 {dimension_numbers = #tpu.dot_dimension_numbers<[1], [0], [0], [1], [0, 0, 1, 1], [], []>} : vector<8x32xf32>, vector<32x128xf32>, vector<8x128xf32> -> vector<8x128xf32>
      %86 = arith.addf %84, %85 : vector<8x128xf32>
      %87 = arith.negf %86 : vector<8x128xf32>
      %88 = math.exp %87 : vector<8x128xf32>
      %cst_33 = arith.constant 1.000000e+00 : f32
      %89 = vector.broadcast %cst_33 : f32 to vector<8x128xf32>
      %90 = arith.addf %89, %88 : vector<8x128xf32>
      %91 = arith.divf %89, %90 : vector<8x128xf32>
      %92 = math.tanh %86 : vector<8x128xf32>
      %93 = vector.extract_strided_slice %91 {offsets = [0, 0], sizes = [8, 32], strides = [1, 1]} : vector<8x128xf32> to vector<8x32xf32>
      %94 = vector.extract_strided_slice %91 {offsets = [0, 32], sizes = [8, 32], strides = [1, 1]} : vector<8x128xf32> to vector<8x32xf32>
      %95 = vector.extract_strided_slice %92 {offsets = [0, 64], sizes = [8, 32], strides = [1, 1]} : vector<8x128xf32> to vector<8x32xf32>
      %96 = vector.extract_strided_slice %91 {offsets = [0, 96], sizes = [8, 32], strides = [1, 1]} : vector<8x128xf32> to vector<8x32xf32>
      %97 = arith.mulf %94, %80 : vector<8x32xf32>
      %98 = arith.mulf %93, %95 : vector<8x32xf32>
      %99 = arith.addf %97, %98 : vector<8x32xf32>
      %100 = math.tanh %99 : vector<8x32xf32>
      %101 = arith.mulf %96, %100 : vector<8x32xf32>
      %102 = vector.extract_strided_slice %25 {offsets = [4, 0, 0], sizes = [1, 8, 128], strides = [1, 1, 1]} : vector<8x8x128xf32> to vector<1x8x128xf32>
      %103 = vector.shape_cast %102 : vector<1x8x128xf32> to vector<8x128xf32>
      %cst_34 = arith.constant dense<0.000000e+00> : vector<8x128xf32>
      %104 = tpu.matmul %101, %12, %cst_34 {dimension_numbers = #tpu.dot_dimension_numbers<[1], [0], [0], [1], [0, 0, 1, 1], [], []>} : vector<8x32xf32>, vector<32x128xf32>, vector<8x128xf32> -> vector<8x128xf32>
      %105 = arith.addf %103, %104 : vector<8x128xf32>
      %106 = arith.negf %105 : vector<8x128xf32>
      %107 = math.exp %106 : vector<8x128xf32>
      %cst_35 = arith.constant 1.000000e+00 : f32
      %108 = vector.broadcast %cst_35 : f32 to vector<8x128xf32>
      %109 = arith.addf %108, %107 : vector<8x128xf32>
      %110 = arith.divf %108, %109 : vector<8x128xf32>
      %111 = math.tanh %105 : vector<8x128xf32>
      %112 = vector.extract_strided_slice %110 {offsets = [0, 0], sizes = [8, 32], strides = [1, 1]} : vector<8x128xf32> to vector<8x32xf32>
      %113 = vector.extract_strided_slice %110 {offsets = [0, 32], sizes = [8, 32], strides = [1, 1]} : vector<8x128xf32> to vector<8x32xf32>
      %114 = vector.extract_strided_slice %111 {offsets = [0, 64], sizes = [8, 32], strides = [1, 1]} : vector<8x128xf32> to vector<8x32xf32>
      %115 = vector.extract_strided_slice %110 {offsets = [0, 96], sizes = [8, 32], strides = [1, 1]} : vector<8x128xf32> to vector<8x32xf32>
      %116 = arith.mulf %113, %99 : vector<8x32xf32>
      %117 = arith.mulf %112, %114 : vector<8x32xf32>
      %118 = arith.addf %116, %117 : vector<8x32xf32>
      %119 = math.tanh %118 : vector<8x32xf32>
      %120 = arith.mulf %115, %119 : vector<8x32xf32>
      %121 = vector.extract_strided_slice %25 {offsets = [5, 0, 0], sizes = [1, 8, 128], strides = [1, 1, 1]} : vector<8x8x128xf32> to vector<1x8x128xf32>
      %122 = vector.shape_cast %121 : vector<1x8x128xf32> to vector<8x128xf32>
      %cst_36 = arith.constant dense<0.000000e+00> : vector<8x128xf32>
      %123 = tpu.matmul %120, %12, %cst_36 {dimension_numbers = #tpu.dot_dimension_numbers<[1], [0], [0], [1], [0, 0, 1, 1], [], []>} : vector<8x32xf32>, vector<32x128xf32>, vector<8x128xf32> -> vector<8x128xf32>
      %124 = arith.addf %122, %123 : vector<8x128xf32>
      %125 = arith.negf %124 : vector<8x128xf32>
      %126 = math.exp %125 : vector<8x128xf32>
      %cst_37 = arith.constant 1.000000e+00 : f32
      %127 = vector.broadcast %cst_37 : f32 to vector<8x128xf32>
      %128 = arith.addf %127, %126 : vector<8x128xf32>
      %129 = arith.divf %127, %128 : vector<8x128xf32>
      %130 = math.tanh %124 : vector<8x128xf32>
      %131 = vector.extract_strided_slice %129 {offsets = [0, 0], sizes = [8, 32], strides = [1, 1]} : vector<8x128xf32> to vector<8x32xf32>
      %132 = vector.extract_strided_slice %129 {offsets = [0, 32], sizes = [8, 32], strides = [1, 1]} : vector<8x128xf32> to vector<8x32xf32>
      %133 = vector.extract_strided_slice %130 {offsets = [0, 64], sizes = [8, 32], strides = [1, 1]} : vector<8x128xf32> to vector<8x32xf32>
      %134 = vector.extract_strided_slice %129 {offsets = [0, 96], sizes = [8, 32], strides = [1, 1]} : vector<8x128xf32> to vector<8x32xf32>
      %135 = arith.mulf %132, %118 : vector<8x32xf32>
      %136 = arith.mulf %131, %133 : vector<8x32xf32>
      %137 = arith.addf %135, %136 : vector<8x32xf32>
      %138 = math.tanh %137 : vector<8x32xf32>
      %139 = arith.mulf %134, %138 : vector<8x32xf32>
      %140 = vector.extract_strided_slice %25 {offsets = [6, 0, 0], sizes = [1, 8, 128], strides = [1, 1, 1]} : vector<8x8x128xf32> to vector<1x8x128xf32>
      %141 = vector.shape_cast %140 : vector<1x8x128xf32> to vector<8x128xf32>
      %cst_38 = arith.constant dense<0.000000e+00> : vector<8x128xf32>
      %142 = tpu.matmul %139, %12, %cst_38 {dimension_numbers = #tpu.dot_dimension_numbers<[1], [0], [0], [1], [0, 0, 1, 1], [], []>} : vector<8x32xf32>, vector<32x128xf32>, vector<8x128xf32> -> vector<8x128xf32>
      %143 = arith.addf %141, %142 : vector<8x128xf32>
      %144 = arith.negf %143 : vector<8x128xf32>
      %145 = math.exp %144 : vector<8x128xf32>
      %cst_39 = arith.constant 1.000000e+00 : f32
      %146 = vector.broadcast %cst_39 : f32 to vector<8x128xf32>
      %147 = arith.addf %146, %145 : vector<8x128xf32>
      %148 = arith.divf %146, %147 : vector<8x128xf32>
      %149 = math.tanh %143 : vector<8x128xf32>
      %150 = vector.extract_strided_slice %148 {offsets = [0, 0], sizes = [8, 32], strides = [1, 1]} : vector<8x128xf32> to vector<8x32xf32>
      %151 = vector.extract_strided_slice %148 {offsets = [0, 32], sizes = [8, 32], strides = [1, 1]} : vector<8x128xf32> to vector<8x32xf32>
      %152 = vector.extract_strided_slice %149 {offsets = [0, 64], sizes = [8, 32], strides = [1, 1]} : vector<8x128xf32> to vector<8x32xf32>
      %153 = vector.extract_strided_slice %148 {offsets = [0, 96], sizes = [8, 32], strides = [1, 1]} : vector<8x128xf32> to vector<8x32xf32>
      %154 = arith.mulf %151, %137 : vector<8x32xf32>
      %155 = arith.mulf %150, %152 : vector<8x32xf32>
      %156 = arith.addf %154, %155 : vector<8x32xf32>
      %157 = math.tanh %156 : vector<8x32xf32>
      %158 = arith.mulf %153, %157 : vector<8x32xf32>
      %159 = vector.extract_strided_slice %25 {offsets = [7, 0, 0], sizes = [1, 8, 128], strides = [1, 1, 1]} : vector<8x8x128xf32> to vector<1x8x128xf32>
      %160 = vector.shape_cast %159 : vector<1x8x128xf32> to vector<8x128xf32>
      %cst_40 = arith.constant dense<0.000000e+00> : vector<8x128xf32>
      %161 = tpu.matmul %158, %12, %cst_40 {dimension_numbers = #tpu.dot_dimension_numbers<[1], [0], [0], [1], [0, 0, 1, 1], [], []>} : vector<8x32xf32>, vector<32x128xf32>, vector<8x128xf32> -> vector<8x128xf32>
      %162 = arith.addf %160, %161 : vector<8x128xf32>
      %163 = arith.negf %162 : vector<8x128xf32>
      %164 = math.exp %163 : vector<8x128xf32>
      %cst_41 = arith.constant 1.000000e+00 : f32
      %165 = vector.broadcast %cst_41 : f32 to vector<8x128xf32>
      %166 = arith.addf %165, %164 : vector<8x128xf32>
      %167 = arith.divf %165, %166 : vector<8x128xf32>
      %168 = math.tanh %162 : vector<8x128xf32>
      %169 = vector.extract_strided_slice %167 {offsets = [0, 0], sizes = [8, 32], strides = [1, 1]} : vector<8x128xf32> to vector<8x32xf32>
      %170 = vector.extract_strided_slice %167 {offsets = [0, 32], sizes = [8, 32], strides = [1, 1]} : vector<8x128xf32> to vector<8x32xf32>
      %171 = vector.extract_strided_slice %168 {offsets = [0, 64], sizes = [8, 32], strides = [1, 1]} : vector<8x128xf32> to vector<8x32xf32>
      %172 = vector.extract_strided_slice %167 {offsets = [0, 96], sizes = [8, 32], strides = [1, 1]} : vector<8x128xf32> to vector<8x32xf32>
      %173 = arith.mulf %170, %156 : vector<8x32xf32>
      %174 = arith.mulf %169, %171 : vector<8x32xf32>
      %175 = arith.addf %173, %174 : vector<8x32xf32>
      %176 = math.tanh %175 : vector<8x32xf32>
      %177 = arith.mulf %172, %176 : vector<8x32xf32>
      %178 = vector.shape_cast %44 : vector<8x32xf32> to vector<1x8x32xf32>
      %179 = vector.shape_cast %63 : vector<8x32xf32> to vector<1x8x32xf32>
      %180 = vector.shape_cast %82 : vector<8x32xf32> to vector<1x8x32xf32>
      %181 = vector.shape_cast %101 : vector<8x32xf32> to vector<1x8x32xf32>
      %182 = vector.shape_cast %120 : vector<8x32xf32> to vector<1x8x32xf32>
      %183 = vector.shape_cast %139 : vector<8x32xf32> to vector<1x8x32xf32>
      %184 = vector.shape_cast %158 : vector<8x32xf32> to vector<1x8x32xf32>
      %185 = vector.shape_cast %177 : vector<8x32xf32> to vector<1x8x32xf32>
      %186 = tpu.concatenate %178, %179, %180, %181, %182, %183, %184, %185 in 0 : vector<1x8x32xf32>, vector<1x8x32xf32>, vector<1x8x32xf32>, vector<1x8x32xf32>, vector<1x8x32xf32>, vector<1x8x32xf32>, vector<1x8x32xf32>, vector<1x8x32xf32> -> vector<8x8x32xf32>
      %187 = arith.index_cast %23 : i32 to index
      %c0_42 = arith.constant 0 : index
      %c0_43 = arith.constant 0 : index
      %188 = vector.load %arg5[%187, %c0_42, %c0_43] : memref<32x8x32xf32, #tpu.memory_space<vmem>>, vector<8x8x32xf32>
      tpu.vector_store %arg5[%187, %c0_42, %c0_43], %186 {strides = array<i32>} : memref<32x8x32xf32, #tpu.memory_space<vmem>>, vector<8x8x32xf32>,
      scf.yield %177, %175 : vector<8x32xf32>, vector<8x32xf32>
    }
    %c4_i32_17 = arith.constant 4 : i32
    %c0_18 = arith.constant 0 : index
    %c0_19 = arith.constant 0 : index
    %17 = vector.load %arg8[%c0_18, %c0_19] : memref<8x32xf32, #tpu.memory_space<vmem>>, vector<8x32xf32>
    tpu.vector_store %arg8[%c0_18, %c0_19], %16#0 {strides = array<i32>} : memref<8x32xf32, #tpu.memory_space<vmem>>, vector<8x32xf32>,
    %c0_20 = arith.constant 0 : index
    %c0_21 = arith.constant 0 : index
    %18 = vector.load %arg9[%c0_20, %c0_21] : memref<8x32xf32, #tpu.memory_space<vmem>>, vector<8x32xf32>
    tpu.vector_store %arg9[%c0_20, %c0_21], %16#1 {strides = array<i32>} : memref<8x32xf32, #tpu.memory_space<vmem>>, vector<8x32xf32>,
    %c1_i32_22 = arith.constant 1 : i32
    %19 = arith.cmpi eq, %arg0, %c1_i32_22 : i32
    %20 = arith.extui %19 : i1 to i32
    %c0_i32_23 = arith.constant 0 : i32
    %21 = arith.cmpi ne, %20, %c0_i32_23 : i32
    scf.if %21 {
      %c0_24 = arith.constant 0 : index
      %c0_25 = arith.constant 0 : index
      %22 = vector.load %arg6[%c0_24, %c0_25] : memref<8x32xf32, #tpu.memory_space<vmem>>, vector<8x32xf32>
      tpu.vector_store %arg6[%c0_24, %c0_25], %16#0 {strides = array<i32>} : memref<8x32xf32, #tpu.memory_space<vmem>>, vector<8x32xf32>,
      %c0_26 = arith.constant 0 : index
      %c0_27 = arith.constant 0 : index
      %23 = vector.load %arg7[%c0_26, %c0_27] : memref<8x32xf32, #tpu.memory_space<vmem>>, vector<8x32xf32>
      tpu.vector_store %arg7[%c0_26, %c0_27], %16#1 {strides = array<i32>} : memref<8x32xf32, #tpu.memory_space<vmem>>, vector<8x32xf32>,
    } else {
    }
    return
  }
  func.func @transform_0(%arg0: i32) -> (i32, i32, i32) {
    %c0_i32 = arith.constant 0 : i32
    %c0_i32_0 = arith.constant 0 : i32
    %c0_i32_1 = arith.constant 0 : i32
    return %arg0, %c0_i32, %c0_i32_0 : i32, i32, i32
  }
  func.func @transform_1(%arg0: i32) -> (i32, i32) {
    %c0_i32 = arith.constant 0 : i32
    %c0_i32_0 = arith.constant 0 : i32
    %c0_i32_1 = arith.constant 0 : i32
    return %c0_i32, %c0_i32_0 : i32, i32
  }
  func.func @transform_2(%arg0: i32) -> (i32, i32) {
    %c0_i32 = arith.constant 0 : i32
    %c0_i32_0 = arith.constant 0 : i32
    %c0_i32_1 = arith.constant 0 : i32
    return %c0_i32, %c0_i32_0 : i32, i32
  }
  func.func @transform_3(%arg0: i32) -> (i32, i32) {
    %c0_i32 = arith.constant 0 : i32
    %c0_i32_0 = arith.constant 0 : i32
    %c0_i32_1 = arith.constant 0 : i32
    return %c0_i32, %c0_i32_0 : i32, i32
  }
  func.func @transform_4(%arg0: i32) -> (i32, i32, i32) {
    %c0_i32 = arith.constant 0 : i32
    %c0_i32_0 = arith.constant 0 : i32
    %c0_i32_1 = arith.constant 0 : i32
    return %arg0, %c0_i32, %c0_i32_0 : i32, i32, i32
  }
  func.func @transform_5(%arg0: i32) -> (i32, i32) {
    %c0_i32 = arith.constant 0 : i32
    %c0_i32_0 = arith.constant 0 : i32
    %c0_i32_1 = arith.constant 0 : i32
    return %c0_i32, %c0_i32_0 : i32, i32
  }
  func.func @transform_6(%arg0: i32) -> (i32, i32) {
    %c0_i32 = arith.constant 0 : i32
    %c0_i32_0 = arith.constant 0 : i32
    %c0_i32_1 = arith.constant 0 : i32
    return %c0_i32, %c0_i32_0 : i32, i32
  }
}

module attributes {stable_mosaic.version = 11 : i64} {
  func.func @_lstm_layer0_kernel(%arg0: i32, %arg1: memref<32x8xi32, #tpu.memory_space<vmem>>, %arg2: memref<16x16xf32, #tpu.memory_space<vmem>>, %arg3: memref<16x128xf32, #tpu.memory_space<vmem>>, %arg4: memref<32x128xf32, #tpu.memory_space<vmem>>, %arg5: memref<1x128xf32, #tpu.memory_space<vmem>>, %arg6: memref<32x8x32xf32, #tpu.memory_space<vmem>>, %arg7: memref<8x32xf32, #tpu.memory_space<vmem>>, %arg8: memref<8x32xf32, #tpu.memory_space<vmem>>, %arg9: memref<8x32xf32, #tpu.memory_space<vmem>>, %arg10: memref<8x32xf32, #tpu.memory_space<vmem>>, %arg11: memref<32x8x128xf32, #tpu.memory_space<vmem>>, %arg12: memref<16x128xf32, #tpu.memory_space<vmem>>) attributes {dimension_semantics = [#tpu.dimension_semantics<arbitrary>], iteration_bounds = array<i64: 2>, scalar_prefetch = 0 : i64, scratch_operands = 4 : i64, tpu.core_type = #tpu.core_type<tc>, window_params = [{transform_indices = @transform_0, window_bounds = array<i64: 32, 8>}, {pipeline_mode = #tpu.pipeline_mode<synchronous>, transform_indices = @transform_1, window_bounds = array<i64: 16, 16>}, {pipeline_mode = #tpu.pipeline_mode<synchronous>, transform_indices = @transform_2, window_bounds = array<i64: 16, 128>}, {pipeline_mode = #tpu.pipeline_mode<synchronous>, transform_indices = @transform_3, window_bounds = array<i64: 32, 128>}, {pipeline_mode = #tpu.pipeline_mode<synchronous>, transform_indices = @transform_4, window_bounds = array<i64: 1, 128>}, {transform_indices = @transform_5, window_bounds = array<i64: 32, 8, 32>}, {pipeline_mode = #tpu.pipeline_mode<synchronous>, transform_indices = @transform_6, window_bounds = array<i64: 8, 32>}, {pipeline_mode = #tpu.pipeline_mode<synchronous>, transform_indices = @transform_7, window_bounds = array<i64: 8, 32>}]} {
    %c0_i32 = arith.constant 0 : i32
    %0 = arith.cmpi eq, %arg0, %c0_i32 : i32
    %1 = arith.extui %0 : i1 to i32
    %c0_i32_0 = arith.constant 0 : i32
    %2 = arith.cmpi ne, %1, %c0_i32_0 : i32
    scf.if %2 {
      %c0_23 = arith.constant 0 : index
      %c0_24 = arith.constant 0 : index
      %28 = vector.load %arg2[%c0_23, %c0_24] : memref<16x16xf32, #tpu.memory_space<vmem>>, vector<16x16xf32>
      %c0_25 = arith.constant 0 : index
      %c0_26 = arith.constant 0 : index
      %29 = vector.load %arg3[%c0_25, %c0_26] : memref<16x128xf32, #tpu.memory_space<vmem>>, vector<16x128xf32>
      %cst_27 = arith.constant dense<0.000000e+00> : vector<16x128xf32>
      %30 = tpu.matmul %28, %29, %cst_27 {dimension_numbers = #tpu.dot_dimension_numbers<[1], [0], [0], [1], [0, 0, 1, 1], [], []>} : vector<16x16xf32>, vector<16x128xf32>, vector<16x128xf32> -> vector<16x128xf32>
      %c0_28 = arith.constant 0 : index
      %c0_29 = arith.constant 0 : index
      %31 = vector.load %arg5[%c0_28, %c0_29] : memref<1x128xf32, #tpu.memory_space<vmem>>, vector<1x128xf32>
      %32 = vector.broadcast %31 : vector<1x128xf32> to vector<16x128xf32>
      %33 = arith.addf %30, %32 : vector<16x128xf32>
      %c0_30 = arith.constant 0 : index
      %c0_31 = arith.constant 0 : index
      %34 = vector.load %arg12[%c0_30, %c0_31] : memref<16x128xf32, #tpu.memory_space<vmem>>, vector<16x128xf32>
      tpu.vector_store %arg12[%c0_30, %c0_31], %33 {strides = array<i32>} : memref<16x128xf32, #tpu.memory_space<vmem>>, vector<16x128xf32>,
    } else {
    }
    %c0 = arith.constant 0 : index
    %c0_1 = arith.constant 0 : index
    %3 = vector.load %arg1[%c0, %c0_1] : memref<32x8xi32, #tpu.memory_space<vmem>>, vector<32x8xi32>
    %4 = vector.shape_cast %3 : vector<32x8xi32> to vector<32x8x1xi32>
    %5 = tpu.iota {dimensions = array<i32: 2>} : vector<32x8x16xi32>
    %6 = vector.broadcast %4 : vector<32x8x1xi32> to vector<32x8x16xi32>
    %7 = arith.cmpi eq, %6, %5 : vector<32x8x16xi32>
    %8 = arith.extui %7 : vector<32x8x16xi1> to vector<32x8x16xi32>
    %9 = arith.sitofp %8 : vector<32x8x16xi32> to vector<32x8x16xf32>
    %10 = vector.shape_cast %9 : vector<32x8x16xf32> to vector<256x16xf32>
    %c0_2 = arith.constant 0 : index
    %c0_3 = arith.constant 0 : index
    %11 = vector.load %arg12[%c0_2, %c0_3] : memref<16x128xf32, #tpu.memory_space<vmem>>, vector<16x128xf32>
    %cst = arith.constant dense<0.000000e+00> : vector<256x128xf32>
    %12 = tpu.matmul %10, %11, %cst {dimension_numbers = #tpu.dot_dimension_numbers<[1], [0], [0], [1], [0, 0, 1, 1], [], []>} : vector<256x16xf32>, vector<16x128xf32>, vector<256x128xf32> -> vector<256x128xf32>
    %13 = vector.shape_cast %12 : vector<256x128xf32> to vector<32x8x128xf32>
    %c0_4 = arith.constant 0 : index
    %c0_5 = arith.constant 0 : index
    %c0_6 = arith.constant 0 : index
    %14 = vector.load %arg11[%c0_4, %c0_5, %c0_6] : memref<32x8x128xf32, #tpu.memory_space<vmem>>, vector<32x8x128xf32>
    tpu.vector_store %arg11[%c0_4, %c0_5, %c0_6], %13 {strides = array<i32>} : memref<32x8x128xf32, #tpu.memory_space<vmem>>, vector<32x8x128xf32>,
    %c0_i32_7 = arith.constant 0 : i32
    %15 = arith.cmpi eq, %arg0, %c0_i32_7 : i32
    %16 = arith.extui %15 : i1 to i32
    %c0_i32_8 = arith.constant 0 : i32
    %17 = arith.cmpi ne, %16, %c0_i32_8 : i32
    scf.if %17 {
      %cst_23 = arith.constant 0.000000e+00 : f32
      %28 = vector.broadcast %cst_23 : f32 to vector<8x32xf32>
      %c0_24 = arith.constant 0 : index
      %c0_25 = arith.constant 0 : index
      %29 = vector.load %arg9[%c0_24, %c0_25] : memref<8x32xf32, #tpu.memory_space<vmem>>, vector<8x32xf32>
      tpu.vector_store %arg9[%c0_24, %c0_25], %28 {strides = array<i32>} : memref<8x32xf32, #tpu.memory_space<vmem>>, vector<8x32xf32>,
      %cst_26 = arith.constant 0.000000e+00 : f32
      %30 = vector.broadcast %cst_26 : f32 to vector<8x32xf32>
      %c0_27 = arith.constant 0 : index
      %c0_28 = arith.constant 0 : index
      %31 = vector.load %arg10[%c0_27, %c0_28] : memref<8x32xf32, #tpu.memory_space<vmem>>, vector<8x32xf32>
      tpu.vector_store %arg10[%c0_27, %c0_28], %30 {strides = array<i32>} : memref<8x32xf32, #tpu.memory_space<vmem>>, vector<8x32xf32>,
    } else {
    }
    %c0_9 = arith.constant 0 : index
    %c0_10 = arith.constant 0 : index
    %18 = vector.load %arg4[%c0_9, %c0_10] : memref<32x128xf32, #tpu.memory_space<vmem>>, vector<32x128xf32>
    %c0_11 = arith.constant 0 : index
    %c0_12 = arith.constant 0 : index
    %19 = vector.load %arg9[%c0_11, %c0_12] : memref<8x32xf32, #tpu.memory_space<vmem>>, vector<8x32xf32>
    %c0_13 = arith.constant 0 : index
    %c0_14 = arith.constant 0 : index
    %20 = vector.load %arg10[%c0_13, %c0_14] : memref<8x32xf32, #tpu.memory_space<vmem>>, vector<8x32xf32>
    %c0_i32_15 = arith.constant 0 : i32
    %c4_i32 = arith.constant 4 : i32
    %21 = arith.addi %c0_i32_15, %c4_i32 : i32
    %c1_i32 = arith.constant 1 : i32
    %22:2 = scf.for %arg13 = %c0_i32_15 to %21 step %c1_i32 iter_args(%arg14 = %19, %arg15 = %20) -> (vector<8x32xf32>, vector<8x32xf32>)  : i32 {
      %c8_i32 = arith.constant 8 : i32
      %28 = arith.muli %arg13, %c8_i32 : i32
      %29 = tpu.assume_multiple %28, 8 : i32
      %30 = arith.index_cast %29 : i32 to index
      %c0_23 = arith.constant 0 : index
      %c0_24 = arith.constant 0 : index
      %31 = vector.load %arg11[%30, %c0_23, %c0_24] : memref<32x8x128xf32, #tpu.memory_space<vmem>>, vector<8x8x128xf32>
      %32 = vector.extract_strided_slice %31 {offsets = [0, 0, 0], sizes = [1, 8, 128], strides = [1, 1, 1]} : vector<8x8x128xf32> to vector<1x8x128xf32>
      %33 = vector.shape_cast %32 : vector<1x8x128xf32> to vector<8x128xf32>
      %cst_25 = arith.constant dense<0.000000e+00> : vector<8x128xf32>
      %34 = tpu.matmul %arg14, %18, %cst_25 {dimension_numbers = #tpu.dot_dimension_numbers<[1], [0], [0], [1], [0, 0, 1, 1], [], []>} : vector<8x32xf32>, vector<32x128xf32>, vector<8x128xf32> -> vector<8x128xf32>
      %35 = arith.addf %33, %34 : vector<8x128xf32>
      %36 = arith.negf %35 : vector<8x128xf32>
      %37 = math.exp %36 : vector<8x128xf32>
      %cst_26 = arith.constant 1.000000e+00 : f32
      %38 = vector.broadcast %cst_26 : f32 to vector<8x128xf32>
      %39 = arith.addf %38, %37 : vector<8x128xf32>
      %40 = arith.divf %38, %39 : vector<8x128xf32>
      %41 = math.tanh %35 : vector<8x128xf32>
      %42 = vector.extract_strided_slice %40 {offsets = [0, 0], sizes = [8, 32], strides = [1, 1]} : vector<8x128xf32> to vector<8x32xf32>
      %43 = vector.extract_strided_slice %40 {offsets = [0, 32], sizes = [8, 32], strides = [1, 1]} : vector<8x128xf32> to vector<8x32xf32>
      %44 = vector.extract_strided_slice %41 {offsets = [0, 64], sizes = [8, 32], strides = [1, 1]} : vector<8x128xf32> to vector<8x32xf32>
      %45 = vector.extract_strided_slice %40 {offsets = [0, 96], sizes = [8, 32], strides = [1, 1]} : vector<8x128xf32> to vector<8x32xf32>
      %46 = arith.mulf %43, %arg15 : vector<8x32xf32>
      %47 = arith.mulf %42, %44 : vector<8x32xf32>
      %48 = arith.addf %46, %47 : vector<8x32xf32>
      %49 = math.tanh %48 : vector<8x32xf32>
      %50 = arith.mulf %45, %49 : vector<8x32xf32>
      %51 = vector.extract_strided_slice %31 {offsets = [1, 0, 0], sizes = [1, 8, 128], strides = [1, 1, 1]} : vector<8x8x128xf32> to vector<1x8x128xf32>
      %52 = vector.shape_cast %51 : vector<1x8x128xf32> to vector<8x128xf32>
      %cst_27 = arith.constant dense<0.000000e+00> : vector<8x128xf32>
      %53 = tpu.matmul %50, %18, %cst_27 {dimension_numbers = #tpu.dot_dimension_numbers<[1], [0], [0], [1], [0, 0, 1, 1], [], []>} : vector<8x32xf32>, vector<32x128xf32>, vector<8x128xf32> -> vector<8x128xf32>
      %54 = arith.addf %52, %53 : vector<8x128xf32>
      %55 = arith.negf %54 : vector<8x128xf32>
      %56 = math.exp %55 : vector<8x128xf32>
      %cst_28 = arith.constant 1.000000e+00 : f32
      %57 = vector.broadcast %cst_28 : f32 to vector<8x128xf32>
      %58 = arith.addf %57, %56 : vector<8x128xf32>
      %59 = arith.divf %57, %58 : vector<8x128xf32>
      %60 = math.tanh %54 : vector<8x128xf32>
      %61 = vector.extract_strided_slice %59 {offsets = [0, 0], sizes = [8, 32], strides = [1, 1]} : vector<8x128xf32> to vector<8x32xf32>
      %62 = vector.extract_strided_slice %59 {offsets = [0, 32], sizes = [8, 32], strides = [1, 1]} : vector<8x128xf32> to vector<8x32xf32>
      %63 = vector.extract_strided_slice %60 {offsets = [0, 64], sizes = [8, 32], strides = [1, 1]} : vector<8x128xf32> to vector<8x32xf32>
      %64 = vector.extract_strided_slice %59 {offsets = [0, 96], sizes = [8, 32], strides = [1, 1]} : vector<8x128xf32> to vector<8x32xf32>
      %65 = arith.mulf %62, %48 : vector<8x32xf32>
      %66 = arith.mulf %61, %63 : vector<8x32xf32>
      %67 = arith.addf %65, %66 : vector<8x32xf32>
      %68 = math.tanh %67 : vector<8x32xf32>
      %69 = arith.mulf %64, %68 : vector<8x32xf32>
      %70 = vector.extract_strided_slice %31 {offsets = [2, 0, 0], sizes = [1, 8, 128], strides = [1, 1, 1]} : vector<8x8x128xf32> to vector<1x8x128xf32>
      %71 = vector.shape_cast %70 : vector<1x8x128xf32> to vector<8x128xf32>
      %cst_29 = arith.constant dense<0.000000e+00> : vector<8x128xf32>
      %72 = tpu.matmul %69, %18, %cst_29 {dimension_numbers = #tpu.dot_dimension_numbers<[1], [0], [0], [1], [0, 0, 1, 1], [], []>} : vector<8x32xf32>, vector<32x128xf32>, vector<8x128xf32> -> vector<8x128xf32>
      %73 = arith.addf %71, %72 : vector<8x128xf32>
      %74 = arith.negf %73 : vector<8x128xf32>
      %75 = math.exp %74 : vector<8x128xf32>
      %cst_30 = arith.constant 1.000000e+00 : f32
      %76 = vector.broadcast %cst_30 : f32 to vector<8x128xf32>
      %77 = arith.addf %76, %75 : vector<8x128xf32>
      %78 = arith.divf %76, %77 : vector<8x128xf32>
      %79 = math.tanh %73 : vector<8x128xf32>
      %80 = vector.extract_strided_slice %78 {offsets = [0, 0], sizes = [8, 32], strides = [1, 1]} : vector<8x128xf32> to vector<8x32xf32>
      %81 = vector.extract_strided_slice %78 {offsets = [0, 32], sizes = [8, 32], strides = [1, 1]} : vector<8x128xf32> to vector<8x32xf32>
      %82 = vector.extract_strided_slice %79 {offsets = [0, 64], sizes = [8, 32], strides = [1, 1]} : vector<8x128xf32> to vector<8x32xf32>
      %83 = vector.extract_strided_slice %78 {offsets = [0, 96], sizes = [8, 32], strides = [1, 1]} : vector<8x128xf32> to vector<8x32xf32>
      %84 = arith.mulf %81, %67 : vector<8x32xf32>
      %85 = arith.mulf %80, %82 : vector<8x32xf32>
      %86 = arith.addf %84, %85 : vector<8x32xf32>
      %87 = math.tanh %86 : vector<8x32xf32>
      %88 = arith.mulf %83, %87 : vector<8x32xf32>
      %89 = vector.extract_strided_slice %31 {offsets = [3, 0, 0], sizes = [1, 8, 128], strides = [1, 1, 1]} : vector<8x8x128xf32> to vector<1x8x128xf32>
      %90 = vector.shape_cast %89 : vector<1x8x128xf32> to vector<8x128xf32>
      %cst_31 = arith.constant dense<0.000000e+00> : vector<8x128xf32>
      %91 = tpu.matmul %88, %18, %cst_31 {dimension_numbers = #tpu.dot_dimension_numbers<[1], [0], [0], [1], [0, 0, 1, 1], [], []>} : vector<8x32xf32>, vector<32x128xf32>, vector<8x128xf32> -> vector<8x128xf32>
      %92 = arith.addf %90, %91 : vector<8x128xf32>
      %93 = arith.negf %92 : vector<8x128xf32>
      %94 = math.exp %93 : vector<8x128xf32>
      %cst_32 = arith.constant 1.000000e+00 : f32
      %95 = vector.broadcast %cst_32 : f32 to vector<8x128xf32>
      %96 = arith.addf %95, %94 : vector<8x128xf32>
      %97 = arith.divf %95, %96 : vector<8x128xf32>
      %98 = math.tanh %92 : vector<8x128xf32>
      %99 = vector.extract_strided_slice %97 {offsets = [0, 0], sizes = [8, 32], strides = [1, 1]} : vector<8x128xf32> to vector<8x32xf32>
      %100 = vector.extract_strided_slice %97 {offsets = [0, 32], sizes = [8, 32], strides = [1, 1]} : vector<8x128xf32> to vector<8x32xf32>
      %101 = vector.extract_strided_slice %98 {offsets = [0, 64], sizes = [8, 32], strides = [1, 1]} : vector<8x128xf32> to vector<8x32xf32>
      %102 = vector.extract_strided_slice %97 {offsets = [0, 96], sizes = [8, 32], strides = [1, 1]} : vector<8x128xf32> to vector<8x32xf32>
      %103 = arith.mulf %100, %86 : vector<8x32xf32>
      %104 = arith.mulf %99, %101 : vector<8x32xf32>
      %105 = arith.addf %103, %104 : vector<8x32xf32>
      %106 = math.tanh %105 : vector<8x32xf32>
      %107 = arith.mulf %102, %106 : vector<8x32xf32>
      %108 = vector.extract_strided_slice %31 {offsets = [4, 0, 0], sizes = [1, 8, 128], strides = [1, 1, 1]} : vector<8x8x128xf32> to vector<1x8x128xf32>
      %109 = vector.shape_cast %108 : vector<1x8x128xf32> to vector<8x128xf32>
      %cst_33 = arith.constant dense<0.000000e+00> : vector<8x128xf32>
      %110 = tpu.matmul %107, %18, %cst_33 {dimension_numbers = #tpu.dot_dimension_numbers<[1], [0], [0], [1], [0, 0, 1, 1], [], []>} : vector<8x32xf32>, vector<32x128xf32>, vector<8x128xf32> -> vector<8x128xf32>
      %111 = arith.addf %109, %110 : vector<8x128xf32>
      %112 = arith.negf %111 : vector<8x128xf32>
      %113 = math.exp %112 : vector<8x128xf32>
      %cst_34 = arith.constant 1.000000e+00 : f32
      %114 = vector.broadcast %cst_34 : f32 to vector<8x128xf32>
      %115 = arith.addf %114, %113 : vector<8x128xf32>
      %116 = arith.divf %114, %115 : vector<8x128xf32>
      %117 = math.tanh %111 : vector<8x128xf32>
      %118 = vector.extract_strided_slice %116 {offsets = [0, 0], sizes = [8, 32], strides = [1, 1]} : vector<8x128xf32> to vector<8x32xf32>
      %119 = vector.extract_strided_slice %116 {offsets = [0, 32], sizes = [8, 32], strides = [1, 1]} : vector<8x128xf32> to vector<8x32xf32>
      %120 = vector.extract_strided_slice %117 {offsets = [0, 64], sizes = [8, 32], strides = [1, 1]} : vector<8x128xf32> to vector<8x32xf32>
      %121 = vector.extract_strided_slice %116 {offsets = [0, 96], sizes = [8, 32], strides = [1, 1]} : vector<8x128xf32> to vector<8x32xf32>
      %122 = arith.mulf %119, %105 : vector<8x32xf32>
      %123 = arith.mulf %118, %120 : vector<8x32xf32>
      %124 = arith.addf %122, %123 : vector<8x32xf32>
      %125 = math.tanh %124 : vector<8x32xf32>
      %126 = arith.mulf %121, %125 : vector<8x32xf32>
      %127 = vector.extract_strided_slice %31 {offsets = [5, 0, 0], sizes = [1, 8, 128], strides = [1, 1, 1]} : vector<8x8x128xf32> to vector<1x8x128xf32>
      %128 = vector.shape_cast %127 : vector<1x8x128xf32> to vector<8x128xf32>
      %cst_35 = arith.constant dense<0.000000e+00> : vector<8x128xf32>
      %129 = tpu.matmul %126, %18, %cst_35 {dimension_numbers = #tpu.dot_dimension_numbers<[1], [0], [0], [1], [0, 0, 1, 1], [], []>} : vector<8x32xf32>, vector<32x128xf32>, vector<8x128xf32> -> vector<8x128xf32>
      %130 = arith.addf %128, %129 : vector<8x128xf32>
      %131 = arith.negf %130 : vector<8x128xf32>
      %132 = math.exp %131 : vector<8x128xf32>
      %cst_36 = arith.constant 1.000000e+00 : f32
      %133 = vector.broadcast %cst_36 : f32 to vector<8x128xf32>
      %134 = arith.addf %133, %132 : vector<8x128xf32>
      %135 = arith.divf %133, %134 : vector<8x128xf32>
      %136 = math.tanh %130 : vector<8x128xf32>
      %137 = vector.extract_strided_slice %135 {offsets = [0, 0], sizes = [8, 32], strides = [1, 1]} : vector<8x128xf32> to vector<8x32xf32>
      %138 = vector.extract_strided_slice %135 {offsets = [0, 32], sizes = [8, 32], strides = [1, 1]} : vector<8x128xf32> to vector<8x32xf32>
      %139 = vector.extract_strided_slice %136 {offsets = [0, 64], sizes = [8, 32], strides = [1, 1]} : vector<8x128xf32> to vector<8x32xf32>
      %140 = vector.extract_strided_slice %135 {offsets = [0, 96], sizes = [8, 32], strides = [1, 1]} : vector<8x128xf32> to vector<8x32xf32>
      %141 = arith.mulf %138, %124 : vector<8x32xf32>
      %142 = arith.mulf %137, %139 : vector<8x32xf32>
      %143 = arith.addf %141, %142 : vector<8x32xf32>
      %144 = math.tanh %143 : vector<8x32xf32>
      %145 = arith.mulf %140, %144 : vector<8x32xf32>
      %146 = vector.extract_strided_slice %31 {offsets = [6, 0, 0], sizes = [1, 8, 128], strides = [1, 1, 1]} : vector<8x8x128xf32> to vector<1x8x128xf32>
      %147 = vector.shape_cast %146 : vector<1x8x128xf32> to vector<8x128xf32>
      %cst_37 = arith.constant dense<0.000000e+00> : vector<8x128xf32>
      %148 = tpu.matmul %145, %18, %cst_37 {dimension_numbers = #tpu.dot_dimension_numbers<[1], [0], [0], [1], [0, 0, 1, 1], [], []>} : vector<8x32xf32>, vector<32x128xf32>, vector<8x128xf32> -> vector<8x128xf32>
      %149 = arith.addf %147, %148 : vector<8x128xf32>
      %150 = arith.negf %149 : vector<8x128xf32>
      %151 = math.exp %150 : vector<8x128xf32>
      %cst_38 = arith.constant 1.000000e+00 : f32
      %152 = vector.broadcast %cst_38 : f32 to vector<8x128xf32>
      %153 = arith.addf %152, %151 : vector<8x128xf32>
      %154 = arith.divf %152, %153 : vector<8x128xf32>
      %155 = math.tanh %149 : vector<8x128xf32>
      %156 = vector.extract_strided_slice %154 {offsets = [0, 0], sizes = [8, 32], strides = [1, 1]} : vector<8x128xf32> to vector<8x32xf32>
      %157 = vector.extract_strided_slice %154 {offsets = [0, 32], sizes = [8, 32], strides = [1, 1]} : vector<8x128xf32> to vector<8x32xf32>
      %158 = vector.extract_strided_slice %155 {offsets = [0, 64], sizes = [8, 32], strides = [1, 1]} : vector<8x128xf32> to vector<8x32xf32>
      %159 = vector.extract_strided_slice %154 {offsets = [0, 96], sizes = [8, 32], strides = [1, 1]} : vector<8x128xf32> to vector<8x32xf32>
      %160 = arith.mulf %157, %143 : vector<8x32xf32>
      %161 = arith.mulf %156, %158 : vector<8x32xf32>
      %162 = arith.addf %160, %161 : vector<8x32xf32>
      %163 = math.tanh %162 : vector<8x32xf32>
      %164 = arith.mulf %159, %163 : vector<8x32xf32>
      %165 = vector.extract_strided_slice %31 {offsets = [7, 0, 0], sizes = [1, 8, 128], strides = [1, 1, 1]} : vector<8x8x128xf32> to vector<1x8x128xf32>
      %166 = vector.shape_cast %165 : vector<1x8x128xf32> to vector<8x128xf32>
      %cst_39 = arith.constant dense<0.000000e+00> : vector<8x128xf32>
      %167 = tpu.matmul %164, %18, %cst_39 {dimension_numbers = #tpu.dot_dimension_numbers<[1], [0], [0], [1], [0, 0, 1, 1], [], []>} : vector<8x32xf32>, vector<32x128xf32>, vector<8x128xf32> -> vector<8x128xf32>
      %168 = arith.addf %166, %167 : vector<8x128xf32>
      %169 = arith.negf %168 : vector<8x128xf32>
      %170 = math.exp %169 : vector<8x128xf32>
      %cst_40 = arith.constant 1.000000e+00 : f32
      %171 = vector.broadcast %cst_40 : f32 to vector<8x128xf32>
      %172 = arith.addf %171, %170 : vector<8x128xf32>
      %173 = arith.divf %171, %172 : vector<8x128xf32>
      %174 = math.tanh %168 : vector<8x128xf32>
      %175 = vector.extract_strided_slice %173 {offsets = [0, 0], sizes = [8, 32], strides = [1, 1]} : vector<8x128xf32> to vector<8x32xf32>
      %176 = vector.extract_strided_slice %173 {offsets = [0, 32], sizes = [8, 32], strides = [1, 1]} : vector<8x128xf32> to vector<8x32xf32>
      %177 = vector.extract_strided_slice %174 {offsets = [0, 64], sizes = [8, 32], strides = [1, 1]} : vector<8x128xf32> to vector<8x32xf32>
      %178 = vector.extract_strided_slice %173 {offsets = [0, 96], sizes = [8, 32], strides = [1, 1]} : vector<8x128xf32> to vector<8x32xf32>
      %179 = arith.mulf %176, %162 : vector<8x32xf32>
      %180 = arith.mulf %175, %177 : vector<8x32xf32>
      %181 = arith.addf %179, %180 : vector<8x32xf32>
      %182 = math.tanh %181 : vector<8x32xf32>
      %183 = arith.mulf %178, %182 : vector<8x32xf32>
      %184 = vector.shape_cast %50 : vector<8x32xf32> to vector<1x8x32xf32>
      %185 = vector.shape_cast %69 : vector<8x32xf32> to vector<1x8x32xf32>
      %186 = vector.shape_cast %88 : vector<8x32xf32> to vector<1x8x32xf32>
      %187 = vector.shape_cast %107 : vector<8x32xf32> to vector<1x8x32xf32>
      %188 = vector.shape_cast %126 : vector<8x32xf32> to vector<1x8x32xf32>
      %189 = vector.shape_cast %145 : vector<8x32xf32> to vector<1x8x32xf32>
      %190 = vector.shape_cast %164 : vector<8x32xf32> to vector<1x8x32xf32>
      %191 = vector.shape_cast %183 : vector<8x32xf32> to vector<1x8x32xf32>
      %192 = tpu.concatenate %184, %185, %186, %187, %188, %189, %190, %191 in 0 : vector<1x8x32xf32>, vector<1x8x32xf32>, vector<1x8x32xf32>, vector<1x8x32xf32>, vector<1x8x32xf32>, vector<1x8x32xf32>, vector<1x8x32xf32>, vector<1x8x32xf32> -> vector<8x8x32xf32>
      %193 = arith.index_cast %29 : i32 to index
      %c0_41 = arith.constant 0 : index
      %c0_42 = arith.constant 0 : index
      %194 = vector.load %arg6[%193, %c0_41, %c0_42] : memref<32x8x32xf32, #tpu.memory_space<vmem>>, vector<8x8x32xf32>
      tpu.vector_store %arg6[%193, %c0_41, %c0_42], %192 {strides = array<i32>} : memref<32x8x32xf32, #tpu.memory_space<vmem>>, vector<8x8x32xf32>,
      scf.yield %183, %181 : vector<8x32xf32>, vector<8x32xf32>
    }
    %c4_i32_16 = arith.constant 4 : i32
    %c0_17 = arith.constant 0 : index
    %c0_18 = arith.constant 0 : index
    %23 = vector.load %arg9[%c0_17, %c0_18] : memref<8x32xf32, #tpu.memory_space<vmem>>, vector<8x32xf32>
    tpu.vector_store %arg9[%c0_17, %c0_18], %22#0 {strides = array<i32>} : memref<8x32xf32, #tpu.memory_space<vmem>>, vector<8x32xf32>,
    %c0_19 = arith.constant 0 : index
    %c0_20 = arith.constant 0 : index
    %24 = vector.load %arg10[%c0_19, %c0_20] : memref<8x32xf32, #tpu.memory_space<vmem>>, vector<8x32xf32>
    tpu.vector_store %arg10[%c0_19, %c0_20], %22#1 {strides = array<i32>} : memref<8x32xf32, #tpu.memory_space<vmem>>, vector<8x32xf32>,
    %c1_i32_21 = arith.constant 1 : i32
    %25 = arith.cmpi eq, %arg0, %c1_i32_21 : i32
    %26 = arith.extui %25 : i1 to i32
    %c0_i32_22 = arith.constant 0 : i32
    %27 = arith.cmpi ne, %26, %c0_i32_22 : i32
    scf.if %27 {
      %c0_23 = arith.constant 0 : index
      %c0_24 = arith.constant 0 : index
      %28 = vector.load %arg7[%c0_23, %c0_24] : memref<8x32xf32, #tpu.memory_space<vmem>>, vector<8x32xf32>
      tpu.vector_store %arg7[%c0_23, %c0_24], %22#0 {strides = array<i32>} : memref<8x32xf32, #tpu.memory_space<vmem>>, vector<8x32xf32>,
      %c0_25 = arith.constant 0 : index
      %c0_26 = arith.constant 0 : index
      %29 = vector.load %arg8[%c0_25, %c0_26] : memref<8x32xf32, #tpu.memory_space<vmem>>, vector<8x32xf32>
      tpu.vector_store %arg8[%c0_25, %c0_26], %22#1 {strides = array<i32>} : memref<8x32xf32, #tpu.memory_space<vmem>>, vector<8x32xf32>,
    } else {
    }
    return
  }
  func.func @transform_0(%arg0: i32) -> (i32, i32) {
    %c0_i32 = arith.constant 0 : i32
    %c0_i32_0 = arith.constant 0 : i32
    return %arg0, %c0_i32 : i32, i32
  }
  func.func @transform_1(%arg0: i32) -> (i32, i32) {
    %c0_i32 = arith.constant 0 : i32
    %c0_i32_0 = arith.constant 0 : i32
    %c0_i32_1 = arith.constant 0 : i32
    return %c0_i32, %c0_i32_0 : i32, i32
  }
  func.func @transform_2(%arg0: i32) -> (i32, i32) {
    %c0_i32 = arith.constant 0 : i32
    %c0_i32_0 = arith.constant 0 : i32
    %c0_i32_1 = arith.constant 0 : i32
    return %c0_i32, %c0_i32_0 : i32, i32
  }
  func.func @transform_3(%arg0: i32) -> (i32, i32) {
    %c0_i32 = arith.constant 0 : i32
    %c0_i32_0 = arith.constant 0 : i32
    %c0_i32_1 = arith.constant 0 : i32
    return %c0_i32, %c0_i32_0 : i32, i32
  }
  func.func @transform_4(%arg0: i32) -> (i32, i32) {
    %c0_i32 = arith.constant 0 : i32
    %c0_i32_0 = arith.constant 0 : i32
    %c0_i32_1 = arith.constant 0 : i32
    return %c0_i32, %c0_i32_0 : i32, i32
  }
  func.func @transform_5(%arg0: i32) -> (i32, i32, i32) {
    %c0_i32 = arith.constant 0 : i32
    %c0_i32_0 = arith.constant 0 : i32
    %c0_i32_1 = arith.constant 0 : i32
    return %arg0, %c0_i32, %c0_i32_0 : i32, i32, i32
  }
  func.func @transform_6(%arg0: i32) -> (i32, i32) {
    %c0_i32 = arith.constant 0 : i32
    %c0_i32_0 = arith.constant 0 : i32
    %c0_i32_1 = arith.constant 0 : i32
    return %c0_i32, %c0_i32_0 : i32, i32
  }
  func.func @transform_7(%arg0: i32) -> (i32, i32) {
    %c0_i32 = arith.constant 0 : i32
    %c0_i32_0 = arith.constant 0 : i32
    %c0_i32_1 = arith.constant 0 : i32
    return %c0_i32, %c0_i32_0 : i32, i32
  }
}

</mosaic_0001>

<bundles_post_ra>
// kernel: encoder_forward.3
= control target key start
LH: loop header
LB: loop body
LE: loop exit
PB: predicated region body
PF: predicated region fallthrough
CT: control target
= control target key end

     0   :  { %s2117_s21 = smov 0   ;;  %s2437_s0 = inlined_call_operand.vmem [shape: f32[64,8,32], index: 0, kind: input, shape index: {}]   ;;  %s2438_s1 = inlined_call_operand.vmem [shape: f32[32,128], index: 1, kind: input, shape index: {}]   ;;  %s2439_s2 = inlined_call_operand.vmem [shape: f32[32,128], index: 2, kind: input, shape index: {}]   ;;  %s2440_s3 = inlined_call_operand.vmem [shape: f32[1,128], index: 3, kind: input, shape index: {}]   ;;  %s2441_s4 = inlined_call_operand.vmem [shape: f32[64,8,32], index: 4, kind: output, shape index: {0}]   ;;  %s2442_s5 = inlined_call_operand.vmem [shape: f32[8,32], index: 5, kind: output, shape index: {1}]   ;;  %s2443_s6 = inlined_call_operand.vmem [shape: f32[8,32], index: 6, kind: output, shape index: {2}]  }
   0x1 LB: > { %s2123_s22 = sadd.s32 4294967295, %s2061_s21   ;;  %p1599_p0 = scmp.ge.s32.totalorder %s2061_s21, 1  ;;  %s2061_s21 = sphi %s2117_s21, %s17_s21  }
   0x2   : > { %p208_p1 = scmp.lt.s32.totalorder %s2061_s21, 3 }
   0x4   : > { %p209_p2 = pnand %p1599_p0, %p208_p1 }
   0x5   : > { %v282_v0 = vld [vmem:[%s2438_s1] sm:$0xff] (!%p209_p2)  ;;  %v283_v1 = vld [vmem:[%s2438_s1 + $0x8] sm:$0xff] (!%p209_p2)  ;;  %v284_v2 = vld [vmem:[%s2438_s1 + $0x10] sm:$0xff] (!%p209_p2)  ;;  %s1600_s29 = sshll.u32 (!%p209_p2), %s2123_s22, 5  ;;  %vm293_vm0 = vcmask (!%p209_p2), 261120   ;;  %p1637_p4 = scmp.ne.s32.totalorder (!%p209_p2), %s2123_s22, 0 }
   0x6   : > { %212 = sbr.rel (%p209_p2) target bundleno = 5898 (0x170a), region = 36  ;;  %v1880_v3 = vpack.c.bf16 (!%p209_p2), %v283_v1, %v282_v0  ;;  %v285_v4 = vld [vmem:[%s2438_s1 + $0x18] sm:$0xff] (!%p209_p2)  ;;  %p239_p3 = scmp.lt.s32.totalorder (!%p209_p2), %s1600_s29, 63  ;;  %v2217_v38 = vld [vmem:[%s2440_s3] ss:$0 sm:$0xff] (!%p209_p2) }
   0x7   : > { %v1884_v5 = vpack.c.bf16 (!%p209_p2), %v285_v4, %v284_v2 }
   0x8   : > { %1881 = vmatprep.subr.bf16.mxu0 (!%p209_p2), %v1880_v3  ;;  %1936 = vmatprep.subr.bf16.mxu1 (!%p209_p2), %v1880_v3 }
   0x9   : > { %1883 = vmatpush3.bf16.msra.mxu0 (!%p209_p2), %v1880_v3  ;;  %1938 = vmatpush3.bf16.msra.mxu1 (!%p209_p2), %v1880_v3 }
   0xa   : > { %1885 = vmatprep.subr.bf16.mxu0 (!%p209_p2), %v1884_v5  ;;  %1937 = vmatprep.subr.bf16.mxu1 (!%p209_p2), %v1884_v5 }
   0xd   : > { %s2447_s29 = smov (!%p239_p3, %s1600_s29), 63  ;;  %1887 = vmatpush3.bf16.msra.mxu0 %v1884_v5  ;;  %1939 = vmatpush3.bf16.msra.mxu1 %v1884_v5 }
   0xe   : > { %s1601_s8 = sshll.u32 %s2447_s29, 3 }
   0xf   : > { %s2143_s11 = scalar_lea.vmem %s2437_s0, %s1601_s8  ;;  %s2148_s14 = scalar_lea.vmem %s2441_s4, %s1601_s8 }
  0x10   : > { %v250_v6 = vld [vmem:[%s2143_s11] sm:$0xff]  ;;  %v251_v8 = vld [vmem:[%s2143_s11 + $0x8] sm:$0xff]  ;;  %v252_v10 = vld [vmem:[%s2143_s11 + $0x10] sm:$0xff] }
  0x11   : > { %v266_v7 = vld [vmem:[%s2143_s11 + $0x80] sm:$0xff]  ;;  %v267_v9 = vld [vmem:[%s2143_s11 + $0x88] sm:$0xff]  ;;  %1744 = vmatprep.mubr.msk.f32.mxu0 %vm293_vm0, %v250_v6  ;;  %v268_v11 = vld [vmem:[%s2143_s11 + $0x90] sm:$0xff] }
  0x12   : > { %1768 = vmatprep.mubr.msk.f32.mxu1 %vm293_vm0, %v266_v7  ;;  %1745 = vmatmul.mubr.msk.f32.vlgmr.msra.gmra.mrb[0].mxu0 %vm293_vm0, %v251_v8  ;;  %v253_v12 = vld [vmem:[%s2143_s11 + $0x18] sm:$0xff]  ;;  %v254_v14 = vld [vmem:[%s2143_s11 + $0x20] sm:$0xff]  ;;  %v255_v16 = vld [vmem:[%s2143_s11 + $0x28] sm:$0xff] }
  0x13   : > { %1769 = vmatmul.mubr.msk.f32.vlgmr.msra.gmra.mrb[0].mxu1 %vm293_vm0, %v267_v9  ;;  %1747 = vmatprep.mubr.msk.f32.mxu0 %vm293_vm0, %v252_v10  ;;  %v269_v13 = vld [vmem:[%s2143_s11 + $0x98] sm:$0xff]  ;;  %v270_v15 = vld [vmem:[%s2143_s11 + $0xa0] sm:$0xff]  ;;  %v271_v17 = vld [vmem:[%s2143_s11 + $0xa8] sm:$0xff] }
  0x14   : > { %1771 = vmatprep.mubr.msk.f32.mxu1 %vm293_vm0, %v268_v11  ;;  %v256_v18 = vld [vmem:[%s2143_s11 + $0x30] sm:$0xff]  ;;  %v257_v20 = vld [vmem:[%s2143_s11 + $0x38] sm:$0xff]  ;;  %v258_v22 = vld [vmem:[%s2143_s11 + $0x40] sm:$0xff] }
  0x15   : > { %v272_v19 = vld [vmem:[%s2143_s11 + $0xb0] sm:$0xff]  ;;  %v273_v21 = vld [vmem:[%s2143_s11 + $0xb8] sm:$0xff]  ;;  %v274_v23 = vld [vmem:[%s2143_s11 + $0xc0] sm:$0xff] }
  0x16   : > { %1748 = vmatmul.mubr.msk.f32.gmra.mrb[2].mxu0 %vm293_vm0, %v253_v12  ;;  %v259_v24 = vld [vmem:[%s2143_s11 + $0x48] sm:$0xff]  ;;  %v260_v26 = vld [vmem:[%s2143_s11 + $0x50] sm:$0xff]  ;;  %v261_v28 = vld [vmem:[%s2143_s11 + $0x58] sm:$0xff] }
  0x17   : > { %1772 = vmatmul.mubr.msk.f32.gmra.mrb[2].mxu1 %vm293_vm0, %v269_v13  ;;  %1750 = vmatprep.mubr.msk.f32.mxu0 %vm293_vm0, %v254_v14  ;;  %v275_v25 = vld [vmem:[%s2143_s11 + $0xc8] sm:$0xff]  ;;  %v276_v27 = vld [vmem:[%s2143_s11 + $0xd0] sm:$0xff]  ;;  %v277_v29 = vld [vmem:[%s2143_s11 + $0xd8] sm:$0xff] }
  0x18   : > { %1774 = vmatprep.mubr.msk.f32.mxu1 %vm293_vm0, %v270_v15  ;;  %v262_v30 = vld [vmem:[%s2143_s11 + $0x60] sm:$0xff]  ;;  %v263_v32 = vld [vmem:[%s2143_s11 + $0x68] sm:$0xff]  ;;  %v264_v34 = vld [vmem:[%s2143_s11 + $0x70] sm:$0xff] }
  0x19   : > { %v278_v31 = vld [vmem:[%s2143_s11 + $0xe0] sm:$0xff]  ;;  %v279_v33 = vld [vmem:[%s2143_s11 + $0xe8] sm:$0xff]  ;;  %v280_v35 = vld [vmem:[%s2143_s11 + $0xf0] sm:$0xff] }
  0x1a   : > { %1751 = vmatmul.mubr.msk.f32.gmra.mrb[4].mxu0 %vm293_vm0, %v255_v16  ;;  %v265_v36 = vld [vmem:[%s2143_s11 + $0x78] sm:$0xff] }
  0x1b   : > { %1775 = vmatmul.mubr.msk.f32.gmra.mrb[4].mxu1 %vm293_vm0, %v271_v17  ;;  %1753 = vmatprep.mubr.msk.f32.mxu0 %vm293_vm0, %v256_v18  ;;  %v281_v37 = vld [vmem:[%s2143_s11 + $0xf8] sm:$0xff] }
  0x1c   : > { %1777 = vmatprep.mubr.msk.f32.mxu1 %vm293_vm0, %v272_v19 }
  0x1e   : > { %1754 = vmatmul.mubr.msk.f32.gmra.mrb[6].mxu0 %vm293_vm0, %v257_v20 }
  0x1f   : > { %1778 = vmatmul.mubr.msk.f32.gmra.mrb[6].mxu1 %vm293_vm0, %v273_v21  ;;  %1756 = vmatprep.mubr.msk.f32.mxu0 %vm293_vm0, %v258_v22 }
  0x20   : > { %1780 = vmatprep.mubr.msk.f32.mxu1 %vm293_vm0, %v274_v23 }
  0x22   : > { %1757 = vmatmul.mubr.msk.f32.gmra.mrb[8].mxu0 %vm293_vm0, %v259_v24 }
  0x23   : > { %1781 = vmatmul.mubr.msk.f32.gmra.mrb[8].mxu1 %vm293_vm0, %v275_v25  ;;  %1759 = vmatprep.mubr.msk.f32.mxu0 %vm293_vm0, %v260_v26 }
  0x24   : > { %1783 = vmatprep.mubr.msk.f32.mxu1 %vm293_vm0, %v276_v27 }
  0x26   : > { %1760 = vmatmul.mubr.msk.f32.gmra.mrb[10].mxu0 %vm293_vm0, %v261_v28 }
  0x27   : > { %1784 = vmatmul.mubr.msk.f32.gmra.mrb[10].mxu1 %vm293_vm0, %v277_v29  ;;  %1762 = vmatprep.mubr.msk.f32.mxu0 %vm293_vm0, %v262_v30 }
  0x28   : > { %1786 = vmatprep.mubr.msk.f32.mxu1 %vm293_vm0, %v278_v31 }
  0x2a   : > { %1763 = vmatmul.mubr.msk.f32.gmra.mrb[12].mxu0 %vm293_vm0, %v263_v32 }
  0x2b   : > { %1787 = vmatmul.mubr.msk.f32.gmra.mrb[12].mxu1 %vm293_vm0, %v279_v33  ;;  %1765 = vmatprep.mubr.msk.f32.mxu0 %vm293_vm0, %v264_v34 }
  0x2c   : > { %1789 = vmatprep.mubr.msk.f32.mxu1 %vm293_vm0, %v280_v35 }
  0x2e   : > { %1766 = vmatmul.mubr.msk.f32.gmra.mrb[14].mxu0 %vm293_vm0, %v265_v36 }
  0x2f   : > { %1790 = vmatmul.mubr.msk.f32.gmra.mrb[14].mxu1 %vm293_vm0, %v281_v37 }
  0xe5   : > { %v1746_v39 = vpop.f32.mrb[0].mxu0 }
  0xe6   : > { %v1770_v40 = vpop.f32.mrb[0].mxu1  ;;  %v462_v41 = vadd.f32 %v1746_v39, %v2217_v38  ;;  %v456_v43 = vpop.f32.mrb[1].mxu0 }
  0xe7   : > { %v542_v42 = vadd.f32 %v1770_v40, %v2217_v38  ;;  %v536_v44 = vpop.f32.mrb[1].mxu1  ;;  %v457_v45 = vadd.f32 %v2217_v38, %v456_v43  ;;  %v2075_v40 = vmov (!%p1637_p4), 0.0  }
  0xe8   : > { %v537_v46 = vadd.f32 %v2217_v38, %v536_v44  ;;  %616 = vst [vmem:[#allocation4 + $0x8] sm:$0xff] %v462_v41  ;;  %651 = vst.msk [vmem:[#allocation2] sm:$0xff] (!%p1637_p4), %vm293_vm0, %v2075_v40 }
  0xe9   : > { %632 = vst [vmem:[#allocation4 + $0x88] sm:$0xff] %v542_v42  ;;  %615 = vst [vmem:[#allocation4] sm:$0xff] %v457_v45  ;;  %v1749_v47 = vpop.f32.mrb[2].mxu0 }
  0xea   : > { %631 = vst [vmem:[#allocation4 + $0x80] sm:$0xff] %v537_v46  ;;  %v1773_v48 = vpop.f32.mrb[2].mxu1  ;;  %v472_v49 = vadd.f32 %v1749_v47, %v2217_v38  ;;  %v466_v51 = vpop.f32.mrb[3].mxu0  ;;  %652 = vst.msk [vmem:[#allocation3] sm:$0xff] (!%p1637_p4), %vm293_vm0, %v2075_v40 }
  0xeb   : > { %v552_v50 = vadd.f32 %v1773_v48, %v2217_v38  ;;  %v546_v52 = vpop.f32.mrb[3].mxu1  ;;  %v467_v53 = vadd.f32 %v2217_v38, %v466_v51 }
  0xec   : > { %v547_v54 = vadd.f32 %v2217_v38, %v546_v52  ;;  %618 = vst [vmem:[#allocation4 + $0x18] sm:$0xff] %v472_v49 }
  0xed   : > { %634 = vst [vmem:[#allocation4 + $0x98] sm:$0xff] %v552_v50  ;;  %617 = vst [vmem:[#allocation4 + $0x10] sm:$0xff] %v467_v53  ;;  %v1752_v55 = vpop.f32.mrb[4].mxu0 }
  0xee   : > { %633 = vst [vmem:[#allocation4 + $0x90] sm:$0xff] %v547_v54  ;;  %v1776_v56 = vpop.f32.mrb[4].mxu1  ;;  %v482_v57 = vadd.f32 %v1752_v55, %v2217_v38  ;;  %v476_v59 = vpop.f32.mrb[5].mxu0 }
  0xef   : > { %v562_v58 = vadd.f32 %v1776_v56, %v2217_v38  ;;  %v556_v60 = vpop.f32.mrb[5].mxu1  ;;  %v477_v61 = vadd.f32 %v2217_v38, %v476_v59 }
  0xf0   : > { %v557_v62 = vadd.f32 %v2217_v38, %v556_v60  ;;  %620 = vst [vmem:[#allocation4 + $0x28] sm:$0xff] %v482_v57 }
  0xf1   : > { %636 = vst [vmem:[#allocation4 + $0xa8] sm:$0xff] %v562_v58  ;;  %619 = vst [vmem:[#allocation4 + $0x20] sm:$0xff] %v477_v61  ;;  %v1755_v63 = vpop.f32.mrb[6].mxu0 }
  0xf2   : > { %635 = vst [vmem:[#allocation4 + $0xa0] sm:$0xff] %v557_v62  ;;  %v1779_v0 = vpop.f32.mrb[6].mxu1  ;;  %v492_v1 = vadd.f32 %v1755_v63, %v2217_v38  ;;  %v486_v3 = vpop.f32.mrb[7].mxu0 }
  0xf3   : > { %v572_v2 = vadd.f32 %v1779_v0, %v2217_v38  ;;  %v566_v4 = vpop.f32.mrb[7].mxu1  ;;  %v487_v5 = vadd.f32 %v2217_v38, %v486_v3 }
  0xf4   : > { %v567_v6 = vadd.f32 %v2217_v38, %v566_v4  ;;  %622 = vst [vmem:[#allocation4 + $0x38] sm:$0xff] %v492_v1 }
  0xf5   : > { %638 = vst [vmem:[#allocation4 + $0xb8] sm:$0xff] %v572_v2  ;;  %621 = vst [vmem:[#allocation4 + $0x30] sm:$0xff] %v487_v5  ;;  %v1758_v7 = vpop.f32.mrb[8].mxu0 }
  0xf6   : > { %637 = vst [vmem:[#allocation4 + $0xb0] sm:$0xff] %v567_v6  ;;  %v1782_v8 = vpop.f32.mrb[8].mxu1  ;;  %v502_v9 = vadd.f32 %v1758_v7, %v2217_v38  ;;  %v496_v11 = vpop.f32.mrb[9].mxu0 }
  0xf7   : > { %v582_v10 = vadd.f32 %v1782_v8, %v2217_v38  ;;  %v576_v12 = vpop.f32.mrb[9].mxu1  ;;  %v497_v13 = vadd.f32 %v2217_v38, %v496_v11 }
  0xf8   : > { %v577_v14 = vadd.f32 %v2217_v38, %v576_v12  ;;  %624 = vst [vmem:[#allocation4 + $0x48] sm:$0xff] %v502_v9 }
  0xf9   : > { %640 = vst [vmem:[#allocation4 + $0xc8] sm:$0xff] %v582_v10  ;;  %623 = vst [vmem:[#allocation4 + $0x40] sm:$0xff] %v497_v13  ;;  %v1761_v15 = vpop.f32.mrb[10].mxu0 }
  0xfa   : > { %639 = vst [vmem:[#allocation4 + $0xc0] sm:$0xff] %v577_v14  ;;  %v1785_v16 = vpop.f32.mrb[10].mxu1  ;;  %v512_v17 = vadd.f32 %v1761_v15, %v2217_v38  ;;  %v506_v19 = vpop.f32.mrb[11].mxu0 }
  0xfb   : > { %v592_v18 = vadd.f32 %v1785_v16, %v2217_v38  ;;  %v586_v20 = vpop.f32.mrb[11].mxu1  ;;  %v507_v21 = vadd.f32 %v2217_v38, %v506_v19 }
  0xfc   : > { %v587_v22 = vadd.f32 %v2217_v38, %v586_v20  ;;  %626 = vst [vmem:[#allocation4 + $0x58] sm:$0xff] %v512_v17 }
  0xfd   : > { %642 = vst [vmem:[#allocation4 + $0xd8] sm:$0xff] %v592_v18  ;;  %625 = vst [vmem:[#allocation4 + $0x50] sm:$0xff] %v507_v21  ;;  %v1764_v23 = vpop.f32.mrb[12].mxu0 }
  0xfe   : > { %641 = vst [vmem:[#allocation4 + $0xd0] sm:$0xff] %v587_v22  ;;  %v1788_v24 = vpop.f32.mrb[12].mxu1  ;;  %v522_v25 = vadd.f32 %v1764_v23, %v2217_v38  ;;  %v516_v27 = vpop.f32.mrb[13].mxu0 }
  0xff   : > { %v602_v26 = vadd.f32 %v1788_v24, %v2217_v38  ;;  %v596_v28 = vpop.f32.mrb[13].mxu1  ;;  %v517_v29 = vadd.f32 %v2217_v38, %v516_v27 }
 0x100   : > { %v597_v30 = vadd.f32 %v2217_v38, %v596_v28  ;;  %628 = vst [vmem:[#allocation4 + $0x68] sm:$0xff] %v522_v25  ;;  %650 = sbr.rel (%p1637_p4) target bundleno = 263 (0x107), region = 40 }
 0x101   : > { %644 = vst [vmem:[#allocation4 + $0xe8] sm:$0xff] %v602_v26  ;;  %627 = vst [vmem:[#allocation4 + $0x60] sm:$0xff] %v517_v29  ;;  %v1767_v31 = vpop.f32.mrb[14].mxu0 }
 0x102   : > { %643 = vst [vmem:[#allocation4 + $0xe0] sm:$0xff] %v597_v30  ;;  %v1791_v32 = vpop.f32.mrb[14].mxu1  ;;  %v532_v33 = vadd.f32 %v1767_v31, %v2217_v38  ;;  %v526_v35 = vpop.f32.mrb[15].mxu0 }
 0x103   : > { %v612_v34 = vadd.f32 %v1791_v32, %v2217_v38  ;;  %v606_v36 = vpop.f32.mrb[15].mxu1  ;;  %v527_v37 = vadd.f32 %v2217_v38, %v526_v35 }
 0x104   : > { %v607_v39 = vadd.f32 %v2217_v38, %v606_v36  ;;  %630 = vst [vmem:[#allocation4 + $0x78] sm:$0xff] %v532_v33 }
 0x105   : > { %646 = vst [vmem:[#allocation4 + $0xf8] sm:$0xff] %v612_v34  ;;  %629 = vst [vmem:[#allocation4 + $0x70] sm:$0xff] %v527_v37 }
 0x106   : > { %645 = vst [vmem:[#allocation4 + $0xf0] sm:$0xff] %v607_v39 }
 0x107 PF: > { %v2257_v41 = vld [vmem:[%s2439_s2] sm:$0xff]  ;;  %v2262_v38 = vld [vmem:[%s2439_s2 + $0x8] sm:$0xff]  ;;  %v2267_v42 = vld [vmem:[%s2439_s2 + $0x10] sm:$0xff]  ;;  %s2278_s27 = smov 0  }
 0x108   : > { %v2272_v43 = vld [vmem:[%s2439_s2 + $0x18] sm:$0xff]  ;;  %v657_v44 = vld [vmem:[#allocation2] sm:$0xff]   ;;  %v658_v45 = vld [vmem:[#allocation3] sm:$0xff]  }
 0x109 LB: >> { %v2287_v46 = vpack.c.bf16 %v2262_v38, %v2257_v41  ;;  %v2076_v47 = vmov 0.0|0.0   ;;  %v2294_v48 = vpack.c.bf16 %v2272_v43, %v2267_v42  ;;  %vm2077_vm1 = vmmov 0   ;;  %s1659_s28 = sshll.u32 %s2073_s27, 6  ;;  %s2079_s30 = smov 64   ;;  %s2073_s27 = sphi %s2278_s27, %s664_s27   ;;  %v2069_v44 = vphi %v657_v44, %v2445_v44   ;;  %v2065_v45 = vphi %v658_v45, %v2444_v45  }
 0x10a   : >> { %1888 = vmatprep.subr.bf16.mxu0 %v2076_v47  ;;  %1894 = vmatprep.subr.bf16.mxu1 %v2076_v47  ;;  %v2078_v49 = vmov 0.0   ;;  %s2317_s29 = scalar_lea.vmem [#allocation4], %s1659_s28  ;;  %s2080_s7 = smov 32  }
 0x10b   : >> { %1890 = vmatpush3.bf16.msra.mxu0 %v2287_v46  ;;  %1800 = vmatprep.mubr.msk.f32.mxu0 %vm2077_vm1, %v2078_v49  ;;  %s2328_s8 = scalar_lea.vmem %s2148_s14, %s1659_s28  ;;  %s2081_s9 = smov 96  }
 0x10c   : >> { %1891 = vmatprep.subr.bf16.mxu0 %v2076_v47  ;;  %1896 = vmatpush3.bf16.msra.mxu1 %v2287_v46  ;;  %s664_s27 = sadd.s32 1, %s2073_s27  }
 0x10d   : >> { %1897 = vmatprep.subr.bf16.mxu1 %v2076_v47  ;;  %1811 = vmatprep.mubr.msk.f32.mxu1 %vm2077_vm1, %v2078_v49  ;;  %v670_v50 = vld [vmem:[%s2317_s29] sm:$0xff]  ;;  %v671_v5 = vld [vmem:[%s2317_s29 + $0x8] sm:$0xff]  ;;  %v672_v23 = vld [vmem:[%s2317_s29 + $0x10] sm:$0xff]  ;;  %p661_p5 = scmp.ge.s32.totalorder %s664_s27, 4  }
 0x10e   : > { %p1656_p6 = scmp.ne.s32.totalorder (%p661_p5), %s2123_s22, 1 }
 0x10f   : >> { %1893 = vmatpush3.bf16.msra.mxu0 %v2294_v48 }
 0x110   : >> { %1899 = vmatpush3.bf16.msra.mxu1 %v2294_v48  ;;  %1900 = vmatprep.subr.bf16.mxu0 %v2076_v47 }
 0x111   : >> { %1906 = vmatprep.subr.bf16.mxu1 %v2076_v47 }
 0x112   : >> { %1801 = vmatmul.mubr.msk.f32.vlgmr.msra.gmra.mrb[0].mxu0 %vm293_vm0, %v2069_v44 }
 0x113   : >> { %1902 = vmatpush3.bf16.msra.mxu0 %v2287_v46  ;;  %1822 = vmatprep.mubr.msk.f32.mxu0 %vm2077_vm1, %v2078_v49 }
 0x114   : >> { %1903 = vmatprep.subr.bf16.mxu0 %v2076_v47 }
 0x117   : >> { %1905 = vmatpush3.bf16.msra.mxu0 %v2294_v48 }
 0x118   : >> { %1912 = vmatprep.subr.bf16.mxu0 %v2076_v47 }
 0x1e5   : >> { %v747_v51 = vpop.f32.mrb[0].mxu0 }
 0x1e6   : >> { %v751_v52 = vadd.f32 %v747_v51, %v670_v50  ;;  %v1802_v53 = vpop.f32.mrb[1].mxu0 }
 0x1e8   : >> { %1979 = vtanh.f32 %v751_v52  ;;  %v1641_v55 = vmul.f32 -1.442695, %v751_v52 }
 0x1ea   : >> { %1981 = vpow2.f32 %v1641_v55 }
 0x1f2   : >> { %v1980_v54 = vpop.eup %1979 }
 0x1f3   : >> { %765 = vrot.lane.b32.xlu0 %v1980_v54, %s2079_s30 }
 0x1f4   : >> { %v1982_v56 = vpop.eup %1981 }
 0x1f5   : >> { %v755_v57 = vadd.f32 1.0, %v1982_v56 }
 0x1f7   : >> { %760 = vrot.lane.b32.xlu0 %v2065_v45, %s2080_s7  ;;  %1983 = vrcp.f32 %v755_v57  ;;  %v673_v45 = vld [vmem:[%s2317_s29 + $0x18] sm:$0xff] }
 0x201   : >> { %v1984_v58 = vpop.eup %1983 }
 0x265   : >> { %v766_v59 = vpop.permute.xlu0 %765 }
 0x266   : >> { %v768_v60 = vmul.f32 %v1984_v58, %v766_v59 }
 0x268   : >> { %770 = vrot.lane.b32.xlu1 %v768_v60, %s2080_s7 }
 0x269   : >> { %v761_v61 = vpop.permute.xlu0 %760 }
 0x26a   : >> { %v763_v62 = vmul.f32 %v1984_v58, %v761_v61 }
 0x2da   : >> { %v771_v63 = vpop.permute.xlu1 %770 }
 0x2db   : >> { %v773_v0 = vadd.f32 %v771_v63, %v763_v62 }
 0x2dd   : >> { %1985 = vtanh.f32 %v773_v0 }
 0x2e7   : >> { %v1986_v1 = vpop.eup %1985 }
 0x2e8   : >> { %776 = vrot.lane.b32.xlu1 %v1986_v1, %s2079_s30 }
 0x35a   : >> { %v777_v2 = vpop.permute.xlu1 %776 }
 0x35b   : >> { %v779_v3 = vmul.f32 %v1984_v58, %v777_v2 }
 0x35d   : >> { %781 = vrot.lane.b32.xlu0 %v779_v3, %s2080_s7  ;;  %v674_v3 = vld [vmem:[%s2317_s29 + $0x20] sm:$0xff] }
 0x3cf   : >> { %v782_v4 = vpop.permute.xlu0 %781 }
 0x3d0   : >> { %1492 = vst.msk [vmem:[%s2328_s8] sm:$0xff] %vm293_vm0, %v782_v4  ;;  %1812 = vmatmul.mubr.msk.f32.vlgmr.msra.gmra.mrb[0].mxu1 %vm293_vm0, %v782_v4 }
 0x3d1   : >> { %1908 = vmatpush3.bf16.msra.mxu1 %v2287_v46  ;;  %1833 = vmatprep.mubr.msk.f32.mxu1 %vm2077_vm1, %v2078_v49 }
 0x3d2   : >> { %1909 = vmatprep.subr.bf16.mxu1 %v2076_v47 }
 0x3d5   : >> { %1911 = vmatpush3.bf16.msra.mxu1 %v2294_v48 }
 0x3d6   : >> { %1918 = vmatprep.subr.bf16.mxu1 %v2076_v47 }
 0x4a3   : >> { %v851_v6 = vpop.f32.mrb[0].mxu1 }
 0x4a4   : >> { %v855_v7 = vadd.f32 %v851_v6, %v671_v5  ;;  %v1813_v8 = vpop.f32.mrb[1].mxu1 }
 0x4a6   : >> { %1987 = vtanh.f32 %v855_v7  ;;  %v1643_v10 = vmul.f32 -1.442695, %v855_v7 }
 0x4a8   : >> { %1989 = vpow2.f32 %v1643_v10 }
 0x4b0   : >> { %v1988_v9 = vpop.eup %1987 }
 0x4b1   : >> { %865 = vrot.lane.b32.xlu1 %v1988_v9, %s2079_s30 }
 0x4b2   : >> { %v1990_v11 = vpop.eup %1989 }
 0x4b3   : >> { %v859_v12 = vadd.f32 1.0, %v1990_v11 }
 0x4b5   : >> { %1991 = vrcp.f32 %v859_v12 }
 0x4bf   : >> { %v1992_v13 = vpop.eup %1991 }
 0x4c0   : >> { %v863_v16 = vmul.f32 %v1992_v13, %v773_v0 }
 0x523   : >> { %v866_v14 = vpop.permute.xlu1 %865 }
 0x524   : >> { %v868_v15 = vmul.f32 %v1992_v13, %v866_v14 }
 0x526   : >> { %870 = vrot.lane.b32.xlu0 %v868_v15, %s2080_s7 }
 0x598   : >> { %v871_v17 = vpop.permute.xlu0 %870 }
 0x599   : >> { %v873_v18 = vadd.f32 %v871_v17, %v863_v16 }
 0x59b   : >> { %1993 = vtanh.f32 %v873_v18 }
 0x5a5   : >> { %v1994_v19 = vpop.eup %1993 }
 0x5a6   : >> { %876 = vrot.lane.b32.xlu1 %v1994_v19, %s2079_s30 }
 0x618   : >> { %v877_v20 = vpop.permute.xlu1 %876 }
 0x619   : >> { %v879_v21 = vmul.f32 %v1992_v13, %v877_v20 }
 0x61b   : >> { %881 = vrot.lane.b32.xlu0 %v879_v21, %s2080_s7  ;;  %v675_v21 = vld [vmem:[%s2317_s29 + $0x28] sm:$0xff] }
 0x68d   : >> { %v882_v22 = vpop.permute.xlu0 %881 }
 0x68e   : >> { %1493 = vst.msk [vmem:[%s2328_s8 + $0x8] sm:$0xff] %vm293_vm0, %v882_v22  ;;  %1823 = vmatmul.mubr.msk.f32.vlgmr.msra.gmra.mrb[2].mxu0 %vm293_vm0, %v882_v22 }
 0x68f   : >> { %1914 = vmatpush3.bf16.msra.mxu0 %v2287_v46  ;;  %1844 = vmatprep.mubr.msk.f32.mxu0 %vm2077_vm1, %v2078_v49 }
 0x690   : >> { %1915 = vmatprep.subr.bf16.mxu0 %v2076_v47 }
 0x693   : >> { %1917 = vmatpush3.bf16.msra.mxu0 %v2294_v48 }
 0x694   : >> { %1924 = vmatprep.subr.bf16.mxu0 %v2076_v47 }
 0x761   : >> { %v951_v24 = vpop.f32.mrb[2].mxu0 }
 0x762   : >> { %v955_v25 = vadd.f32 %v951_v24, %v672_v23  ;;  %v1824_v26 = vpop.f32.mrb[3].mxu0 }
 0x764   : >> { %1995 = vtanh.f32 %v955_v25  ;;  %v1645_v28 = vmul.f32 -1.442695, %v955_v25 }
 0x766   : >> { %1997 = vpow2.f32 %v1645_v28 }
 0x76e   : >> { %v1996_v27 = vpop.eup %1995 }
 0x76f   : >> { %965 = vrot.lane.b32.xlu1 %v1996_v27, %s2079_s30 }
 0x770   : >> { %v1998_v29 = vpop.eup %1997 }
 0x771   : >> { %v959_v30 = vadd.f32 1.0, %v1998_v29 }
 0x773   : >> { %1999 = vrcp.f32 %v959_v30 }
 0x77d   : >> { %v2000_v31 = vpop.eup %1999 }
 0x77e   : >> { %v963_v34 = vmul.f32 %v2000_v31, %v873_v18 }
 0x7e1   : >> { %v966_v32 = vpop.permute.xlu1 %965 }
 0x7e2   : >> { %v968_v33 = vmul.f32 %v2000_v31, %v966_v32 }
 0x7e4   : >> { %970 = vrot.lane.b32.xlu0 %v968_v33, %s2080_s7 }
 0x856   : >> { %v971_v35 = vpop.permute.xlu0 %970 }
 0x857   : >> { %v973_v36 = vadd.f32 %v971_v35, %v963_v34  ;;  %v676_v35 = vld [vmem:[%s2317_s29 + $0x30] sm:$0xff] }
 0x859   : >> { %2001 = vtanh.f32 %v973_v36 }
 0x863   : >> { %v2002_v37 = vpop.eup %2001 }
 0x864   : >> { %976 = vrot.lane.b32.xlu1 %v2002_v37, %s2079_s30 }
 0x8d6   : >> { %v977_v39 = vpop.permute.xlu1 %976 }
 0x8d7   : >> { %v979_v40 = vmul.f32 %v2000_v31, %v977_v39 }
 0x8d9   : >> { %981 = vrot.lane.b32.xlu0 %v979_v40, %s2080_s7 }
 0x94b   : >> { %v982_v44 = vpop.permute.xlu0 %981 }
 0x94c   : >> { %1494 = vst.msk [vmem:[%s2328_s8 + $0x10] sm:$0xff] %vm293_vm0, %v982_v44  ;;  %1834 = vmatmul.mubr.msk.f32.vlgmr.msra.gmra.mrb[2].mxu1 %vm293_vm0, %v982_v44 }
 0x94d   : >> { %1920 = vmatpush3.bf16.msra.mxu1 %v2287_v46  ;;  %1855 = vmatprep.mubr.msk.f32.mxu1 %vm2077_vm1, %v2078_v49 }
 0x94e   : >> { %1921 = vmatprep.subr.bf16.mxu1 %v2076_v47 }
 0x951   : >> { %1923 = vmatpush3.bf16.msra.mxu1 %v2294_v48 }
 0x952   : >> { %1930 = vmatprep.subr.bf16.mxu1 %v2076_v47 }
 0xa1f   : >> { %v1051_v50 = vpop.f32.mrb[2].mxu1 }
 0xa20   : >> { %v1055_v51 = vadd.f32 %v1051_v50, %v673_v45  ;;  %v1835_v52 = vpop.f32.mrb[3].mxu1 }
 0xa22   : >> { %2003 = vtanh.f32 %v1055_v51  ;;  %v1647_v54 = vmul.f32 -1.442695, %v1055_v51 }
 0xa24   : >> { %2005 = vpow2.f32 %v1647_v54 }
 0xa2c   : >> { %v2004_v53 = vpop.eup %2003 }
 0xa2d   : >> { %1065 = vrot.lane.b32.xlu1 %v2004_v53, %s2079_s30 }
 0xa2e   : >> { %v2006_v55 = vpop.eup %2005 }
 0xa2f   : >> { %v1059_v56 = vadd.f32 1.0, %v2006_v55 }
 0xa31   : >> { %2007 = vrcp.f32 %v1059_v56 }
 0xa3b   : >> { %v2008_v57 = vpop.eup %2007 }
 0xa3c   : >> { %v1063_v60 = vmul.f32 %v2008_v57, %v973_v36 }
 0xa9f   : >> { %v1066_v58 = vpop.permute.xlu1 %1065 }
 0xaa0   : >> { %v1068_v59 = vmul.f32 %v2008_v57, %v1066_v58 }
 0xaa2   : >> { %1070 = vrot.lane.b32.xlu0 %v1068_v59, %s2080_s7 }
 0xb14   : >> { %v1071_v61 = vpop.permute.xlu0 %1070 }
 0xb15   : >> { %v1073_v62 = vadd.f32 %v1071_v61, %v1063_v60  ;;  %v677_v61 = vld [vmem:[%s2317_s29 + $0x38] sm:$0xff] }
 0xb17   : >> { %2009 = vtanh.f32 %v1073_v62 }
 0xb21   : >> { %v2010_v63 = vpop.eup %2009 }
 0xb22   : >> { %1076 = vrot.lane.b32.xlu1 %v2010_v63, %s2079_s30 }
 0xb94   : >> { %v1077_v0 = vpop.permute.xlu1 %1076 }
 0xb95   : >> { %v1079_v1 = vmul.f32 %v2008_v57, %v1077_v0 }
 0xb97   : >> { %1081 = vrot.lane.b32.xlu0 %v1079_v1, %s2080_s7 }
 0xc09   : >> { %v1082_v2 = vpop.permute.xlu0 %1081 }
 0xc0a   : >> { %1495 = vst.msk [vmem:[%s2328_s8 + $0x18] sm:$0xff] %vm293_vm0, %v1082_v2  ;;  %1845 = vmatmul.mubr.msk.f32.vlgmr.msra.gmra.mrb[4].mxu0 %vm293_vm0, %v1082_v2 }
 0xc0b   : >> { %1926 = vmatpush3.bf16.msra.mxu0 %v2287_v46  ;;  %1866 = vmatprep.mubr.msk.f32.mxu0 %vm2077_vm1, %v2078_v49 }
 0xc0c   : >> { %1927 = vmatprep.subr.bf16.mxu0 %v2076_v47 }
 0xc0f   : >> { %1929 = vmatpush3.bf16.msra.mxu0 %v2294_v48 }
 0xcdd   : >> { %v1151_v4 = vpop.f32.mrb[4].mxu0 }
 0xcde   : >> { %v1155_v5 = vadd.f32 %v1151_v4, %v674_v3  ;;  %v1846_v6 = vpop.f32.mrb[5].mxu0 }
 0xce0   : >> { %2011 = vtanh.f32 %v1155_v5  ;;  %v1649_v8 = vmul.f32 -1.442695, %v1155_v5 }
 0xce2   : >> { %2013 = vpow2.f32 %v1649_v8 }
 0xcea   : >> { %v2012_v7 = vpop.eup %2011 }
 0xceb   : >> { %1165 = vrot.lane.b32.xlu1 %v2012_v7, %s2079_s30 }
 0xcec   : >> { %v2014_v9 = vpop.eup %2013 }
 0xced   : >> { %v1159_v10 = vadd.f32 1.0, %v2014_v9 }
 0xcef   : >> { %2015 = vrcp.f32 %v1159_v10 }
 0xcf9   : >> { %v2016_v11 = vpop.eup %2015 }
 0xcfa   : >> { %v1163_v14 = vmul.f32 %v2016_v11, %v1073_v62 }
 0xd5d   : >> { %v1166_v12 = vpop.permute.xlu1 %1165 }
 0xd5e   : >> { %v1168_v13 = vmul.f32 %v2016_v11, %v1166_v12 }
 0xd60   : >> { %1170 = vrot.lane.b32.xlu0 %v1168_v13, %s2080_s7 }
 0xdd2   : >> { %v1171_v15 = vpop.permute.xlu0 %1170 }
 0xdd3   : >> { %v1173_v16 = vadd.f32 %v1171_v15, %v1163_v14 }
 0xdd5   : >> { %2017 = vtanh.f32 %v1173_v16 }
 0xddf   : >> { %v2018_v17 = vpop.eup %2017 }
 0xde0   : >> { %1176 = vrot.lane.b32.xlu1 %v2018_v17, %s2079_s30 }
 0xe52   : >> { %v1177_v18 = vpop.permute.xlu1 %1176 }
 0xe53   : >> { %v1179_v19 = vmul.f32 %v2016_v11, %v1177_v18 }
 0xe55   : >> { %1181 = vrot.lane.b32.xlu0 %v1179_v19, %s2080_s7 }
 0xec7   : >> { %v1182_v20 = vpop.permute.xlu0 %1181 }
 0xec8   : >> { %1496 = vst.msk [vmem:[%s2328_s8 + $0x20] sm:$0xff] %vm293_vm0, %v1182_v20  ;;  %1856 = vmatmul.mubr.msk.f32.vlgmr.msra.gmra.mrb[4].mxu1 %vm293_vm0, %v1182_v20 }
 0xec9   : >> { %1932 = vmatpush3.bf16.msra.mxu1 %v2287_v46  ;;  %1877 = vmatprep.mubr.msk.f32.mxu1 %vm2077_vm1, %v2078_v49 }
 0xeca   : >> { %1933 = vmatprep.subr.bf16.mxu1 %v2076_v47 }
 0xecd   : >> { %1935 = vmatpush3.bf16.msra.mxu1 %v2294_v48 }
 0xf9b   : >> { %v1251_v22 = vpop.f32.mrb[4].mxu1 }
 0xf9c   : >> { %v1255_v23 = vadd.f32 %v1251_v22, %v675_v21  ;;  %v1857_v24 = vpop.f32.mrb[5].mxu1 }
 0xf9e   : >> { %2019 = vtanh.f32 %v1255_v23  ;;  %v1651_v26 = vmul.f32 -1.442695, %v1255_v23 }
 0xfa0   : >> { %2021 = vpow2.f32 %v1651_v26 }
 0xfa8   : >> { %v2020_v25 = vpop.eup %2019 }
 0xfa9   : >> { %1265 = vrot.lane.b32.xlu1 %v2020_v25, %s2079_s30 }
 0xfaa   : >> { %v2022_v27 = vpop.eup %2021 }
 0xfab   : >> { %v1259_v28 = vadd.f32 1.0, %v2022_v27 }
 0xfad   : >> { %2023 = vrcp.f32 %v1259_v28 }
 0xfb7   : >> { %v2024_v46 = vpop.eup %2023 }
 0xfb8   : >> { %v1263_v48 = vmul.f32 %v2024_v46, %v1173_v16 }
0x101b   : >> { %v1266_v49 = vpop.permute.xlu1 %1265 }
0x101c   : >> { %v1268_v47 = vmul.f32 %v2024_v46, %v1266_v49 }
0x101e   : >> { %1270 = vrot.lane.b32.xlu0 %v1268_v47, %s2080_s7 }
0x1090   : >> { %v1271_v29 = vpop.permute.xlu0 %1270 }
0x1091   : >> { %v1273_v30 = vadd.f32 %v1271_v29, %v1263_v48 }
0x1093   : >> { %2025 = vtanh.f32 %v1273_v30 }
0x109d   : >> { %v2026_v31 = vpop.eup %2025 }
0x109e   : >> { %1276 = vrot.lane.b32.xlu1 %v2026_v31, %s2079_s30 }
0x1110   : >> { %v1277_v32 = vpop.permute.xlu1 %1276 }
0x1111   : >> { %v1279_v33 = vmul.f32 %v2024_v46, %v1277_v32 }
0x1113   : >> { %1281 = vrot.lane.b32.xlu0 %v1279_v33, %s2080_s7 }
0x1185   : >> { %v1282_v34 = vpop.permute.xlu0 %1281 }
0x1186   : >> { %1497 = vst.msk [vmem:[%s2328_s8 + $0x28] sm:$0xff] %vm293_vm0, %v1282_v34  ;;  %1867 = vmatmul.mubr.msk.f32.vlgmr.msra.gmra.mrb[6].mxu0 %vm293_vm0, %v1282_v34 }
0x1259   : >> { %v1351_v36 = vpop.f32.mrb[6].mxu0 }
0x125a   : >> { %v1355_v37 = vadd.f32 %v1351_v36, %v676_v35  ;;  %v1868_v39 = vpop.f32.mrb[7].mxu0 }
0x125c   : >> { %2027 = vtanh.f32 %v1355_v37  ;;  %v1653_v44 = vmul.f32 -1.442695, %v1355_v37 }
0x125e   : >> { %2029 = vpow2.f32 %v1653_v44 }
0x1266   : >> { %v2028_v40 = vpop.eup %2027 }
0x1267   : >> { %1365 = vrot.lane.b32.xlu1 %v2028_v40, %s2079_s30 }
0x1268   : >> { %v2030_v45 = vpop.eup %2029 }
0x1269   : >> { %v1359_v50 = vadd.f32 1.0, %v2030_v45 }
0x126b   : >> { %2031 = vrcp.f32 %v1359_v50 }
0x1275   : >> { %v2032_v51 = vpop.eup %2031 }
0x1276   : >> { %v1363_v54 = vmul.f32 %v2032_v51, %v1273_v30 }
0x12d9   : >> { %v1366_v52 = vpop.permute.xlu1 %1365 }
0x12da   : >> { %v1368_v53 = vmul.f32 %v2032_v51, %v1366_v52 }
0x12dc   : >> { %1370 = vrot.lane.b32.xlu0 %v1368_v53, %s2080_s7 }
0x134e   : >> { %v1371_v55 = vpop.permute.xlu0 %1370 }
0x134f   : >> { %v1373_v56 = vadd.f32 %v1371_v55, %v1363_v54 }
0x1351   : >> { %2033 = vtanh.f32 %v1373_v56 }
0x135b   : >> { %v2034_v57 = vpop.eup %2033 }
0x135c   : >> { %1376 = vrot.lane.b32.xlu1 %v2034_v57, %s2079_s30 }
0x13ce   : >> { %v1377_v58 = vpop.permute.xlu1 %1376 }
0x13cf   : >> { %v1379_v59 = vmul.f32 %v2032_v51, %v1377_v58 }
0x13d1   : >> { %1381 = vrot.lane.b32.xlu0 %v1379_v59, %s2080_s7 }
0x1443   : >> { %v1382_v60 = vpop.permute.xlu0 %1381 }
0x1444   : >> { %1498 = vst.msk [vmem:[%s2328_s8 + $0x30] sm:$0xff] %vm293_vm0, %v1382_v60  ;;  %1878 = vmatmul.mubr.msk.f32.vlgmr.msra.gmra.mrb[6].mxu1 %vm293_vm0, %v1382_v60 }
0x1517   : >> { %v1451_v62 = vpop.f32.mrb[6].mxu1 }
0x1518   : >> { %v1455_v63 = vadd.f32 %v1451_v62, %v677_v61  ;;  %v1879_v0 = vpop.f32.mrb[7].mxu1 }
0x151a   : >> { %2035 = vtanh.f32 %v1455_v63  ;;  %v1655_v2 = vmul.f32 -1.442695, %v1455_v63 }
0x151c   : >> { %2037 = vpow2.f32 %v1655_v2 }
0x1524   : >> { %v2036_v1 = vpop.eup %2035 }
0x1525   : >> { %1465 = vrot.lane.b32.xlu1 %v2036_v1, %s2079_s30 }
0x1526   : >> { %v2038_v3 = vpop.eup %2037 }
0x1527   : >> { %v1459_v4 = vadd.f32 1.0, %v2038_v3 }
0x1529   : >> { %2039 = vrcp.f32 %v1459_v4 }
0x1533   : >> { %v2040_v5 = vpop.eup %2039 }
0x1534   : >> { %v1463_v8 = vmul.f32 %v2040_v5, %v1373_v56 }
0x1597   : >> { %v1466_v6 = vpop.permute.xlu1 %1465 }
0x1598   : >> { %v1468_v7 = vmul.f32 %v2040_v5, %v1466_v6 }
0x159a   : >> { %1470 = vrot.lane.b32.xlu0 %v1468_v7, %s2080_s7 }
0x160c   : >> { %v1471_v9 = vpop.permute.xlu0 %1470 }
0x160d   : >> { %v1473_v10 = vadd.f32 %v1471_v9, %v1463_v8 }
0x160f   : >> { %2041 = vtanh.f32 %v1473_v10 }
0x1619   : >> { %v2042_v11 = vpop.eup %2041 }
0x161a   : >> { %1476 = vrot.lane.b32.xlu1 %v2042_v11, %s2079_s30 }
0x161e   : >> { %1501 = vrot.lane.b32.xlu1 %v1473_v10, %s2081_s9 }
0x168c   : >> { %v1477_v12 = vpop.permute.xlu1 %1476 }
0x168d   : >> { %v1479_v13 = vmul.f32 %v2040_v5, %v1477_v12 }
0x168f   : >> { %1481 = vrot.lane.b32.xlu0 %v1479_v13, %s2080_s7 }
0x1690   : >> { %v1502_v14 = vpop.permute.xlu1 %1501  }
0x1691   : >> { %v2444_v45 = vmov %v1502_v14  ;;  %1505 = vst.msk [vmem:[#allocation3] sm:$0xff] (%p661_p5), %vm293_vm0, %v1502_v14 }
0x16fc   : > { %663 = sbr.rel (!%p661_p5) target bundleno = 265 (0x109), region = 99 }
0x1701   : >> { %v1482_v15 = vpop.permute.xlu0 %1481  }
0x1702   : >> { %1499 = vst.msk [vmem:[%s2328_s8 + $0x38] sm:$0xff] %vm293_vm0, %v1482_v15  ;;  %v2445_v44 = vmov %v1482_v15  ;;  %1504 = vst.msk [vmem:[#allocation2] sm:$0xff] (%p661_p5), %vm293_vm0, %v1482_v15 }
0x1703   : > { %1509 = sbr.rel (%p1656_p6) target bundleno = 5898 (0x170a), region = 51  ;;  %1510 = vst.msk [vmem:[%s2442_s5] sm:$0xff] (!%p1656_p6), %vm293_vm0, %v1482_v15  ;;  %1511 = vst.msk [vmem:[%s2443_s6] sm:$0xff] (!%p1656_p6), %vm293_vm0, %v1502_v14 }
0x170a PF: > { %s17_s21 = sadd.s32 1, %s2061_s21  }
0x170b   : > { %p14_p7 = scmp.ge.s32.totalorder %s17_s21, 4  }
0x170d   :  { %16 = sbr.rel (!%p14_p7) target bundleno = 1 (0x1), region = 110 }

// kernel: encoder_forward.2
= control target key start
LH: loop header
LB: loop body
LE: loop exit
PB: predicated region body
PF: predicated region fallthrough
CT: control target
= control target key end

     0   :  { %s2575_s24 = smov 0   ;;  %s2904_s0 = inlined_call_operand.vmem [shape: s32[64,8], index: 0, kind: input, shape index: {}]   ;;  %s2905_s1 = inlined_call_operand.vmem [shape: f32[16,16], index: 1, kind: input, shape index: {}]   ;;  %s2906_s2 = inlined_call_operand.vmem [shape: f32[16,128], index: 2, kind: input, shape index: {}]   ;;  %s2907_s3 = inlined_call_operand.vmem [shape: f32[32,128], index: 3, kind: input, shape index: {}]   ;;  %s2908_s4 = inlined_call_operand.vmem [shape: f32[1,128], index: 4, kind: input, shape index: {}]   ;;  %s2909_s5 = inlined_call_operand.vmem [shape: f32[64,8,32], index: 5, kind: output, shape index: {0}]   ;;  %s2910_s6 = inlined_call_operand.vmem [shape: f32[8,32], index: 6, kind: output, shape index: {1}]   ;;  %s2911_s7 = inlined_call_operand.vmem [shape: f32[8,32], index: 7, kind: output, shape index: {2}]  }
   0x1 LB: > { %s2581_s25 = sadd.s32 4294967295, %s2513_s24   ;;  %p2012_p0 = scmp.ge.s32.totalorder %s2513_s24, 1  ;;  %s2513_s24 = sphi %s2575_s24, %s18_s24  }
   0x2   : > { %p233_p1 = scmp.lt.s32.totalorder %s2513_s24, 3 }
   0x4   : > { %p234_p2 = pnand %p2012_p0, %p233_p1 }
   0x5   : > { %s2013_s26 = sshll.u32 (!%p234_p2), %s2581_s25, 2  ;;  %s2015_s27 = sshll.u32 (!%p234_p2), %s2581_s25, 5 }
   0x6   : > { %237 = sbr.rel (%p234_p2) target bundleno = 6271 (0x187f), region = 40  ;;  %p266_p3 = scmp.lt.s32.totalorder (!%p234_p2), %s2013_s26, 7 }
   0x7   : > { %p272_p4 = scmp.lt.s32.totalorder (!%p234_p2), %s2015_s27, 63  ;;  %p2017_p5 = scmp.ne.s32.totalorder (!%p234_p2), %s2581_s25, 0 }
   0xd   : > { %s2915_s26 = smov (!%p266_p3, %s2013_s26), 7  ;;  %s2917_s27 = smov (!%p272_p4, %s2015_s27), 63 }
   0xe   : > { %s2014_s28 = sshll.u32 %s2915_s26, 3  ;;  %s2016_s9 = sshll.u32 %s2917_s27, 3  ;;  %v283_v0 = vld [vmem:[%s2906_s2] sm:$0xff] (!%p2017_p5)  ;;  %v284_v1 = vld [vmem:[%s2906_s2 + $0x8] sm:$0xff] (!%p2017_p5)  ;;  %vm292_vm0 = vcmask (!%p2017_p5), 130048  }
   0xf   : > { %s2590_s8 = scalar_lea.vmem %s2904_s0, %s2014_s28  ;;  %s2595_s12 = scalar_lea.vmem %s2909_s5, %s2016_s9  ;;  %v281_v2 = vld [vmem:[%s2905_s1] sm:$0xff] (!%p2017_p5)  ;;  %v2333_v3 = vpack.c.bf16 (!%p2017_p5), %v284_v1, %v283_v0  ;;  %v282_v4 = vld [vmem:[%s2905_s1 + $0x8] sm:$0xff] (!%p2017_p5) }
  0x10   : > { %280 = sbr.rel (%p2017_p5) target bundleno = 237 (0xed), region = 44  ;;  %2190 = vmatprep.mubr.msk.f32.mxu0 (!%p2017_p5), %vm292_vm0, %v281_v2  ;;  %v2018_v5 = vld [vmem:[%s2908_s4] ss:$0 sm:$0xff] (!%p2017_p5) }
  0x11   : > { %2334 = vmatprep.subr.bf16.mxu0 (!%p2017_p5), %v2333_v3 }
  0x12   : > { %2336 = vmatpush3.bf16.msra.mxu0 (!%p2017_p5), %v2333_v3 }
  0x15   : > { %2191 = vmatmul.mubr.msk.f32.vlgmr.msra.gmra.mrb[0].mxu0 (!%p2017_p5), %vm292_vm0, %v282_v4 }
  0xe8   : > { %v2192_v6 = vpop.f32.mrb[0].mxu0 }
  0xe9   : > { %v371_v7 = vadd.f32 %v2192_v6, %v2018_v5  ;;  %v365_v8 = vpop.f32.mrb[1].mxu0 }
  0xea   : > { %v366_v9 = vadd.f32 %v2018_v5, %v365_v8 }
  0xeb   : > { %375 = vst [vmem:[#allocation5 + $0x8] sm:$0xff] %v371_v7 }
  0xec   : > { %374 = vst [vmem:[#allocation5] sm:$0xff] %v366_v9 }
  0xed PF: > { %v380_v10 = vlaneseq  ;;  %v376_v15 = vld [vmem:[%s2590_s8] sm:$0xff]  ;;  %v378_v18 = vld [vmem:[%s2590_s8 + $0x10] sm:$0xff]  ;;  %v379_v41 = vld [vmem:[%s2590_s8 + $0x18] sm:$0xff]  ;;  %vm704_vm1 = vcmask 130048   ;;  %v2527_v62 = vmov 0.0  }
  0xee   : > { %v377_v42 = vld [vmem:[%s2590_s8 + $0x8] sm:$0xff] }
  0xef   : > { %v381_v13 = vshrl.u32 %v380_v10, 7  ;;  %v2621_v59 = vand.u32 127, %v380_v10 }
  0xf1   : > { %v389_v16 = vsub.s32 1, %v381_v13  ;;  %v382_v17 = vsub.s32 0, %v381_v13  ;;  %v396_v23 = vsub.s32 2, %v381_v13  ;;  %v403_v26 = vsub.s32 3, %v381_v13 }
  0xf2   : > { %v703_v12 = vld [vmem:[#allocation5 + $0x8] sm:$0xff]  ;;  %v410_v29 = vsub.s32 4, %v381_v13  ;;  %v417_v32 = vsub.s32 5, %v381_v13  ;;  %v424_v35 = vsub.s32 6, %v381_v13  ;;  %v431_v38 = vsub.s32 7, %v381_v13 }
  0xf3   : > { %v702_v11 = vld [vmem:[#allocation5] sm:$0xff]  ;;  %v390_v19 = vrot.slane %v376_v15, %v389_v16  ;;  %v383_v20 = vrot.slane %v376_v15, %v382_v17  ;;  %v502_v21 = vrot.slane %v378_v18, %v389_v16  ;;  %v495_v22 = vrot.slane %v378_v18, %v382_v17 }
  0xf4   : > { %v2337_v14 = vpack.c.bf16 %v703_v12, %v702_v11  ;;  %v509_v24 = vrot.slane %v378_v18, %v396_v23  ;;  %v397_v25 = vrot.slane %v376_v15, %v396_v23  ;;  %v516_v27 = vrot.slane %v378_v18, %v403_v26 }
  0xf5   : > { %392 = vbcast.lane.b32.xlu1 %v390_v19, 256  ;;  %385 = vbcast.lane.b32.xlu0 %v383_v20, 256  ;;  %v404_v28 = vrot.slane %v376_v15, %v403_v26  ;;  %v523_v30 = vrot.slane %v378_v18, %v410_v29  ;;  %v411_v31 = vrot.slane %v376_v15, %v410_v29 }
  0xf6   : > { %2338 = vmatprep.subr.bf16.mxu0 %v2337_v14  ;;  %2389 = vmatprep.subr.bf16.mxu1 %v2337_v14  ;;  %v530_v33 = vrot.slane %v378_v18, %v417_v32  ;;  %v418_v34 = vrot.slane %v376_v15, %v417_v32  ;;  %v537_v36 = vrot.slane %v378_v18, %v424_v35 }
  0xf7   : > { %2340 = vmatpush3.bf16.msra.mxu0 %v2337_v14  ;;  %2390 = vmatpush3.bf16.msra.mxu1 %v2337_v14  ;;  %v425_v37 = vrot.slane %v376_v15, %v424_v35  ;;  %v544_v39 = vrot.slane %v378_v18, %v431_v38  ;;  %v432_v40 = vrot.slane %v376_v15, %v431_v38 }
  0xf8   : > { %v551_v43 = vrot.slane %v379_v41, %v382_v17  ;;  %v439_v44 = vrot.slane %v377_v42, %v382_v17  ;;  %v558_v45 = vrot.slane %v379_v41, %v389_v16  ;;  %v446_v46 = vrot.slane %v377_v42, %v389_v16 }
  0xf9   : > { %504 = vbcast.lane.b32.xlu1 %v502_v21, 256  ;;  %497 = vbcast.lane.b32.xlu0 %v495_v22, 256  ;;  %v565_v47 = vrot.slane %v379_v41, %v396_v23  ;;  %v453_v48 = vrot.slane %v377_v42, %v396_v23  ;;  %v572_v49 = vrot.slane %v379_v41, %v403_v26 }
  0xfa   : > { %v460_v50 = vrot.slane %v377_v42, %v403_v26  ;;  %v579_v51 = vrot.slane %v379_v41, %v410_v29  ;;  %v467_v52 = vrot.slane %v377_v42, %v410_v29  ;;  %v586_v53 = vrot.slane %v379_v41, %v417_v32 }
  0xfb   : > { %v474_v54 = vrot.slane %v377_v42, %v417_v32  ;;  %v593_v55 = vrot.slane %v379_v41, %v424_v35  ;;  %v481_v56 = vrot.slane %v377_v42, %v424_v35  ;;  %v600_v57 = vrot.slane %v379_v41, %v431_v38 }
  0xfc   : > { %v488_v58 = vrot.slane %v377_v42, %v431_v38 }
  0xfd   : > { %511 = vbcast.lane.b32.xlu1 %v509_v24, 256  ;;  %399 = vbcast.lane.b32.xlu0 %v397_v25, 256 }
 0x101   : > { %518 = vbcast.lane.b32.xlu1 %v516_v27, 256  ;;  %406 = vbcast.lane.b32.xlu0 %v404_v28, 256 }
 0x105   : > { %525 = vbcast.lane.b32.xlu1 %v523_v30, 256  ;;  %413 = vbcast.lane.b32.xlu0 %v411_v31, 256 }
 0x109   : > { %532 = vbcast.lane.b32.xlu1 %v530_v33, 256  ;;  %420 = vbcast.lane.b32.xlu0 %v418_v34, 256 }
 0x10d   : > { %539 = vbcast.lane.b32.xlu1 %v537_v36, 256  ;;  %427 = vbcast.lane.b32.xlu0 %v425_v37, 256 }
 0x111   : > { %546 = vbcast.lane.b32.xlu1 %v544_v39, 256  ;;  %434 = vbcast.lane.b32.xlu0 %v432_v40, 256 }
 0x115   : > { %553 = vbcast.lane.b32.xlu1 %v551_v43, 256  ;;  %441 = vbcast.lane.b32.xlu0 %v439_v44, 256 }
 0x119   : > { %560 = vbcast.lane.b32.xlu1 %v558_v45, 256  ;;  %448 = vbcast.lane.b32.xlu0 %v446_v46, 256 }
 0x11d   : > { %567 = vbcast.lane.b32.xlu1 %v565_v47, 256  ;;  %455 = vbcast.lane.b32.xlu0 %v453_v48, 256 }
 0x121   : > { %574 = vbcast.lane.b32.xlu1 %v572_v49, 256  ;;  %462 = vbcast.lane.b32.xlu0 %v460_v50, 256 }
 0x125   : > { %581 = vbcast.lane.b32.xlu1 %v579_v51, 256  ;;  %469 = vbcast.lane.b32.xlu0 %v467_v52, 256 }
 0x129   : > { %588 = vbcast.lane.b32.xlu1 %v586_v53, 256  ;;  %476 = vbcast.lane.b32.xlu0 %v474_v54, 256 }
 0x12d   : > { %595 = vbcast.lane.b32.xlu1 %v593_v55, 256  ;;  %483 = vbcast.lane.b32.xlu0 %v481_v56, 256 }
 0x131   : > { %602 = vbcast.lane.b32.xlu1 %v600_v57, 256  ;;  %490 = vbcast.lane.b32.xlu0 %v488_v58, 256 }
 0x167   : > { %v393_v60 = vpop.permute.xlu1 %392  ;;  %v386_v61 = vpop.permute.xlu0 %385 }
 0x168   : > { %vm607_vm2 = vcmp.eq.s32.totalorder %v393_v60, %v2621_v59  ;;  %vm606_vm3 = vcmp.eq.s32.totalorder %v386_v61, %v2621_v59 }
 0x169   : > { %v2022_v63 = vsel %vm607_vm2, 1.0, %v2527_v62  ;;  %v2021_v0 = vsel %vm606_vm3, 1.0, %v2527_v62 }
 0x16a   : > { %2197 = vmatprep.mubr.msk.f32.mxu0 %vm704_vm1, %v2021_v0 }
 0x16b   : > { %v505_v1 = vpop.permute.xlu1 %504  ;;  %2198 = vmatmul.mubr.msk.f32.vlgmr.msra.gmra.mrb[0].mxu0 %vm704_vm1, %v2022_v63  ;;  %v498_v2 = vpop.permute.xlu0 %497 }
 0x16c   : > { %vm623_vm4 = vcmp.eq.s32.totalorder %v505_v1, %v2621_v59  ;;  %vm622_vm5 = vcmp.eq.s32.totalorder %v498_v2, %v2621_v59 }
 0x16d   : > { %v2038_v3 = vsel %vm623_vm4, 1.0, %v2527_v62  ;;  %v2037_v4 = vsel %vm622_vm5, 1.0, %v2527_v62 }
 0x16e   : > { %2221 = vmatprep.mubr.msk.f32.mxu1 %vm704_vm1, %v2037_v4 }
 0x16f   : > { %v512_v5 = vpop.permute.xlu1 %511  ;;  %2222 = vmatmul.mubr.msk.f32.vlgmr.msra.gmra.mrb[0].mxu1 %vm704_vm1, %v2038_v3  ;;  %v400_v6 = vpop.permute.xlu0 %399 }
 0x170   : > { %vm624_vm6 = vcmp.eq.s32.totalorder %v512_v5, %v2621_v59  ;;  %vm608_vm7 = vcmp.eq.s32.totalorder %v400_v6, %v2621_v59 }
 0x171   : > { %v2039_v7 = vsel %vm624_vm6, 1.0, %v2527_v62  ;;  %v2023_v8 = vsel %vm608_vm7, 1.0, %v2527_v62 }
 0x172   : > { %2200 = vmatprep.mubr.msk.f32.mxu0 %vm704_vm1, %v2023_v8  ;;  %2224 = vmatprep.mubr.msk.f32.mxu1 %vm704_vm1, %v2039_v7 }
 0x173   : > { %v519_v9 = vpop.permute.xlu1 %518  ;;  %v407_v10 = vpop.permute.xlu0 %406 }
 0x174   : > { %vm625_vm8 = vcmp.eq.s32.totalorder %v519_v9, %v2621_v59  ;;  %vm609_vm9 = vcmp.eq.s32.totalorder %v407_v10, %v2621_v59 }
 0x175   : > { %v2040_v11 = vsel %vm625_vm8, 1.0, %v2527_v62  ;;  %v2024_v12 = vsel %vm609_vm9, 1.0, %v2527_v62 }
 0x176   : > { %2201 = vmatmul.mubr.msk.f32.gmra.mrb[2].mxu0 %vm704_vm1, %v2024_v12  ;;  %2225 = vmatmul.mubr.msk.f32.gmra.mrb[2].mxu1 %vm704_vm1, %v2040_v11 }
 0x177   : > { %v526_v13 = vpop.permute.xlu1 %525  ;;  %v414_v14 = vpop.permute.xlu0 %413 }
 0x178   : > { %vm626_vm10 = vcmp.eq.s32.totalorder %v526_v13, %v2621_v59  ;;  %vm610_vm11 = vcmp.eq.s32.totalorder %v414_v14, %v2621_v59 }
 0x179   : > { %v2041_v15 = vsel %vm626_vm10, 1.0, %v2527_v62  ;;  %v2025_v16 = vsel %vm610_vm11, 1.0, %v2527_v62 }
 0x17a   : > { %2203 = vmatprep.mubr.msk.f32.mxu0 %vm704_vm1, %v2025_v16  ;;  %2227 = vmatprep.mubr.msk.f32.mxu1 %vm704_vm1, %v2041_v15 }
 0x17b   : > { %v533_v17 = vpop.permute.xlu1 %532  ;;  %v421_v18 = vpop.permute.xlu0 %420 }
 0x17c   : > { %vm627_vm12 = vcmp.eq.s32.totalorder %v533_v17, %v2621_v59  ;;  %vm611_vm13 = vcmp.eq.s32.totalorder %v421_v18, %v2621_v59 }
 0x17d   : > { %v2042_v19 = vsel %vm627_vm12, 1.0, %v2527_v62  ;;  %v2026_v20 = vsel %vm611_vm13, 1.0, %v2527_v62 }
 0x17e   : > { %2204 = vmatmul.mubr.msk.f32.gmra.mrb[4].mxu0 %vm704_vm1, %v2026_v20  ;;  %2228 = vmatmul.mubr.msk.f32.gmra.mrb[4].mxu1 %vm704_vm1, %v2042_v19 }
 0x17f   : > { %v540_v21 = vpop.permute.xlu1 %539  ;;  %v428_v22 = vpop.permute.xlu0 %427 }
 0x180   : > { %vm628_vm14 = vcmp.eq.s32.totalorder %v540_v21, %v2621_v59  ;;  %vm612_vm15 = vcmp.eq.s32.totalorder %v428_v22, %v2621_v59 }
 0x181   : > { %v2043_v23 = vsel %vm628_vm14, 1.0, %v2527_v62  ;;  %v2027_v24 = vsel %vm612_vm15, 1.0, %v2527_v62 }
 0x182   : > { %2206 = vmatprep.mubr.msk.f32.mxu0 %vm704_vm1, %v2027_v24  ;;  %2230 = vmatprep.mubr.msk.f32.mxu1 %vm704_vm1, %v2043_v23 }
 0x183   : > { %v547_v25 = vpop.permute.xlu1 %546  ;;  %v435_v26 = vpop.permute.xlu0 %434 }
 0x184   : > { %vm629_vm0 = vcmp.eq.s32.totalorder %v547_v25, %v2621_v59  ;;  %vm613_vm2 = vcmp.eq.s32.totalorder %v435_v26, %v2621_v59 }
 0x185   : > { %v2044_v27 = vsel %vm629_vm0, 1.0, %v2527_v62  ;;  %v2028_v28 = vsel %vm613_vm2, 1.0, %v2527_v62 }
 0x186   : > { %2207 = vmatmul.mubr.msk.f32.gmra.mrb[6].mxu0 %vm704_vm1, %v2028_v28  ;;  %2231 = vmatmul.mubr.msk.f32.gmra.mrb[6].mxu1 %vm704_vm1, %v2044_v27 }
 0x187   : > { %v554_v29 = vpop.permute.xlu1 %553  ;;  %v442_v30 = vpop.permute.xlu0 %441 }
 0x188   : > { %vm630_vm3 = vcmp.eq.s32.totalorder %v554_v29, %v2621_v59  ;;  %vm614_vm4 = vcmp.eq.s32.totalorder %v442_v30, %v2621_v59  ;;  %v2528_v29 = vmov (!%p2017_p5), 0.0  }
 0x189   : > { %v2045_v31 = vsel %vm630_vm3, 1.0, %v2527_v62  ;;  %v2029_v32 = vsel %vm614_vm4, 1.0, %v2527_v62 }
 0x18a   : > { %2209 = vmatprep.mubr.msk.f32.mxu0 %vm704_vm1, %v2029_v32  ;;  %2233 = vmatprep.mubr.msk.f32.mxu1 %vm704_vm1, %v2045_v31 }
 0x18b   : > { %v561_v33 = vpop.permute.xlu1 %560  ;;  %v449_v34 = vpop.permute.xlu0 %448 }
 0x18c   : > { %vm631_vm5 = vcmp.eq.s32.totalorder %v561_v33, %v2621_v59  ;;  %vm615_vm6 = vcmp.eq.s32.totalorder %v449_v34, %v2621_v59 }
 0x18d   : > { %v2046_v35 = vsel %vm631_vm5, 1.0, %v2527_v62  ;;  %v2030_v36 = vsel %vm615_vm6, 1.0, %v2527_v62 }
 0x18e   : > { %2210 = vmatmul.mubr.msk.f32.gmra.mrb[8].mxu0 %vm704_vm1, %v2030_v36  ;;  %2234 = vmatmul.mubr.msk.f32.gmra.mrb[8].mxu1 %vm704_vm1, %v2046_v35 }
 0x18f   : > { %v568_v37 = vpop.permute.xlu1 %567  ;;  %v456_v38 = vpop.permute.xlu0 %455 }
 0x190   : > { %vm632_vm7 = vcmp.eq.s32.totalorder %v568_v37, %v2621_v59  ;;  %vm616_vm8 = vcmp.eq.s32.totalorder %v456_v38, %v2621_v59 }
 0x191   : > { %v2047_v39 = vsel %vm632_vm7, 1.0, %v2527_v62  ;;  %v2031_v40 = vsel %vm616_vm8, 1.0, %v2527_v62 }
 0x192   : > { %2212 = vmatprep.mubr.msk.f32.mxu0 %vm704_vm1, %v2031_v40  ;;  %2236 = vmatprep.mubr.msk.f32.mxu1 %vm704_vm1, %v2047_v39 }
 0x193   : > { %v575_v41 = vpop.permute.xlu1 %574  ;;  %v463_v42 = vpop.permute.xlu0 %462 }
 0x194   : > { %vm633_vm9 = vcmp.eq.s32.totalorder %v575_v41, %v2621_v59  ;;  %vm617_vm10 = vcmp.eq.s32.totalorder %v463_v42, %v2621_v59 }
 0x195   : > { %v2048_v43 = vsel %vm633_vm9, 1.0, %v2527_v62  ;;  %v2032_v44 = vsel %vm617_vm10, 1.0, %v2527_v62 }
 0x196   : > { %2213 = vmatmul.mubr.msk.f32.gmra.mrb[10].mxu0 %vm704_vm1, %v2032_v44  ;;  %2237 = vmatmul.mubr.msk.f32.gmra.mrb[10].mxu1 %vm704_vm1, %v2048_v43 }
 0x197   : > { %v582_v45 = vpop.permute.xlu1 %581  ;;  %v470_v46 = vpop.permute.xlu0 %469 }
 0x198   : > { %vm634_vm11 = vcmp.eq.s32.totalorder %v582_v45, %v2621_v59  ;;  %vm618_vm12 = vcmp.eq.s32.totalorder %v470_v46, %v2621_v59 }
 0x199   : > { %v2049_v47 = vsel %vm634_vm11, 1.0, %v2527_v62  ;;  %v2033_v48 = vsel %vm618_vm12, 1.0, %v2527_v62 }
 0x19a   : > { %2215 = vmatprep.mubr.msk.f32.mxu0 %vm704_vm1, %v2033_v48  ;;  %2239 = vmatprep.mubr.msk.f32.mxu1 %vm704_vm1, %v2049_v47 }
 0x19b   : > { %v589_v49 = vpop.permute.xlu1 %588  ;;  %v477_v50 = vpop.permute.xlu0 %476 }
 0x19c   : > { %vm635_vm13 = vcmp.eq.s32.totalorder %v589_v49, %v2621_v59  ;;  %vm619_vm14 = vcmp.eq.s32.totalorder %v477_v50, %v2621_v59 }
 0x19d   : > { %v2050_v51 = vsel %vm635_vm13, 1.0, %v2527_v62  ;;  %v2034_v52 = vsel %vm619_vm14, 1.0, %v2527_v62 }
 0x19e   : > { %2216 = vmatmul.mubr.msk.f32.gmra.mrb[12].mxu0 %vm704_vm1, %v2034_v52  ;;  %2240 = vmatmul.mubr.msk.f32.gmra.mrb[12].mxu1 %vm704_vm1, %v2050_v51 }
 0x19f   : > { %v596_v53 = vpop.permute.xlu1 %595  ;;  %v484_v54 = vpop.permute.xlu0 %483 }
 0x1a0   : > { %vm636_vm15 = vcmp.eq.s32.totalorder %v596_v53, %v2621_v59  ;;  %vm620_vm0 = vcmp.eq.s32.totalorder %v484_v54, %v2621_v59 }
 0x1a1   : > { %v2051_v55 = vsel %vm636_vm15, 1.0, %v2527_v62  ;;  %v2035_v56 = vsel %vm620_vm0, 1.0, %v2527_v62 }
 0x1a2   : > { %2218 = vmatprep.mubr.msk.f32.mxu0 %vm704_vm1, %v2035_v56  ;;  %2242 = vmatprep.mubr.msk.f32.mxu1 %vm704_vm1, %v2051_v55 }
 0x1a3   : > { %v603_v57 = vpop.permute.xlu1 %602  ;;  %v491_v58 = vpop.permute.xlu0 %490 }
 0x1a4   : > { %vm637_vm2 = vcmp.eq.s32.totalorder %v603_v57, %v2621_v59  ;;  %vm621_vm3 = vcmp.eq.s32.totalorder %v491_v58, %v2621_v59 }
 0x1a5   : > { %v2052_v60 = vsel %vm637_vm2, 1.0, %v2527_v62  ;;  %v2036_v61 = vsel %vm621_vm3, 1.0, %v2527_v62 }
 0x1a6   : > { %2219 = vmatmul.mubr.msk.f32.gmra.mrb[14].mxu0 %vm704_vm1, %v2036_v61  ;;  %2243 = vmatmul.mubr.msk.f32.gmra.mrb[14].mxu1 %vm704_vm1, %v2052_v60  ;;  %vm1061_vm1 = vcmask (!%p2017_p5), 261120  }
 0x1a7   : > { %1062 = vst.msk [vmem:[#allocation2] sm:$0xff] (!%p2017_p5), %vm1061_vm1, %v2528_v29  ;;  %1063 = vst.msk [vmem:[#allocation3] sm:$0xff] (!%p2017_p5), %vm1061_vm1, %v2528_v29 }
 0x23e   : > { %v2199_v63 = vpop.f32.mrb[0].mxu0 }
 0x23f   : > { %1027 = vst [vmem:[#allocation4 + $0x8] sm:$0xff] %v2199_v63  ;;  %v867_v0 = vpop.f32.mrb[1].mxu0 }
 0x240   : > { %1026 = vst [vmem:[#allocation4] sm:$0xff] %v867_v0 }
 0x242   : > { %v2223_v1 = vpop.f32.mrb[0].mxu1 }
 0x243   : > { %1043 = vst [vmem:[#allocation4 + $0x88] sm:$0xff] %v2223_v1  ;;  %v947_v2 = vpop.f32.mrb[1].mxu1 }
 0x244   : > { %1042 = vst [vmem:[#allocation4 + $0x80] sm:$0xff] %v947_v2 }
 0x249   : > { %v2202_v3 = vpop.f32.mrb[2].mxu0  ;;  %v2226_v4 = vpop.f32.mrb[2].mxu1 }
 0x24a   : > { %1029 = vst [vmem:[#allocation4 + $0x18] sm:$0xff] %v2202_v3  ;;  %1045 = vst [vmem:[#allocation4 + $0x98] sm:$0xff] %v2226_v4  ;;  %v877_v59 = vpop.f32.mrb[3].mxu0  ;;  %v957_v5 = vpop.f32.mrb[3].mxu1 }
 0x24b   : > { %1028 = vst [vmem:[#allocation4 + $0x10] sm:$0xff] %v877_v59  ;;  %1044 = vst [vmem:[#allocation4 + $0x90] sm:$0xff] %v957_v5 }
 0x251   : > { %v2205_v62 = vpop.f32.mrb[4].mxu0  ;;  %v2229_v6 = vpop.f32.mrb[4].mxu1 }
 0x252   : > { %1031 = vst [vmem:[#allocation4 + $0x28] sm:$0xff] %v2205_v62  ;;  %1047 = vst [vmem:[#allocation4 + $0xa8] sm:$0xff] %v2229_v6  ;;  %v887_v7 = vpop.f32.mrb[5].mxu0  ;;  %v967_v8 = vpop.f32.mrb[5].mxu1 }
 0x253   : > { %1030 = vst [vmem:[#allocation4 + $0x20] sm:$0xff] %v887_v7  ;;  %1046 = vst [vmem:[#allocation4 + $0xa0] sm:$0xff] %v967_v8 }
 0x259   : > { %v2208_v9 = vpop.f32.mrb[6].mxu0  ;;  %v2232_v10 = vpop.f32.mrb[6].mxu1 }
 0x25a   : > { %1033 = vst [vmem:[#allocation4 + $0x38] sm:$0xff] %v2208_v9  ;;  %1049 = vst [vmem:[#allocation4 + $0xb8] sm:$0xff] %v2232_v10  ;;  %v897_v11 = vpop.f32.mrb[7].mxu0  ;;  %v977_v12 = vpop.f32.mrb[7].mxu1 }
 0x25b   : > { %1032 = vst [vmem:[#allocation4 + $0x30] sm:$0xff] %v897_v11  ;;  %1048 = vst [vmem:[#allocation4 + $0xb0] sm:$0xff] %v977_v12 }
 0x261   : > { %v2211_v13 = vpop.f32.mrb[8].mxu0  ;;  %v2235_v14 = vpop.f32.mrb[8].mxu1 }
 0x262   : > { %1035 = vst [vmem:[#allocation4 + $0x48] sm:$0xff] %v2211_v13  ;;  %1051 = vst [vmem:[#allocation4 + $0xc8] sm:$0xff] %v2235_v14  ;;  %v907_v15 = vpop.f32.mrb[9].mxu0  ;;  %v987_v16 = vpop.f32.mrb[9].mxu1 }
 0x263   : > { %1034 = vst [vmem:[#allocation4 + $0x40] sm:$0xff] %v907_v15  ;;  %1050 = vst [vmem:[#allocation4 + $0xc0] sm:$0xff] %v987_v16 }
 0x269   : > { %v2214_v17 = vpop.f32.mrb[10].mxu0  ;;  %v2238_v18 = vpop.f32.mrb[10].mxu1 }
 0x26a   : > { %1037 = vst [vmem:[#allocation4 + $0x58] sm:$0xff] %v2214_v17  ;;  %1053 = vst [vmem:[#allocation4 + $0xd8] sm:$0xff] %v2238_v18  ;;  %v917_v19 = vpop.f32.mrb[11].mxu0  ;;  %v997_v20 = vpop.f32.mrb[11].mxu1 }
 0x26b   : > { %1036 = vst [vmem:[#allocation4 + $0x50] sm:$0xff] %v917_v19  ;;  %1052 = vst [vmem:[#allocation4 + $0xd0] sm:$0xff] %v997_v20 }
 0x271   : > { %v2217_v21 = vpop.f32.mrb[12].mxu0  ;;  %v2241_v22 = vpop.f32.mrb[12].mxu1 }
 0x272   : > { %1039 = vst [vmem:[#allocation4 + $0x68] sm:$0xff] %v2217_v21  ;;  %1055 = vst [vmem:[#allocation4 + $0xe8] sm:$0xff] %v2241_v22  ;;  %v927_v23 = vpop.f32.mrb[13].mxu0  ;;  %v1007_v24 = vpop.f32.mrb[13].mxu1 }
 0x273   : > { %1038 = vst [vmem:[#allocation4 + $0x60] sm:$0xff] %v927_v23  ;;  %1054 = vst [vmem:[#allocation4 + $0xe0] sm:$0xff] %v1007_v24 }
 0x275   : > { %1060 = sbr.rel (%p2017_p5) target bundleno = 636 (0x27c), region = 48 }
 0x279   : > { %v2220_v25 = vpop.f32.mrb[14].mxu0  ;;  %v2244_v26 = vpop.f32.mrb[14].mxu1 }
 0x27a   : > { %1041 = vst [vmem:[#allocation4 + $0x78] sm:$0xff] %v2220_v25  ;;  %1057 = vst [vmem:[#allocation4 + $0xf8] sm:$0xff] %v2244_v26  ;;  %v937_v27 = vpop.f32.mrb[15].mxu0  ;;  %v1017_v28 = vpop.f32.mrb[15].mxu1 }
 0x27b   : > { %1040 = vst [vmem:[#allocation4 + $0x70] sm:$0xff] %v937_v27  ;;  %1056 = vst [vmem:[#allocation4 + $0xf0] sm:$0xff] %v1017_v28 }
 0x27c PF: > { %v2724_v30 = vld [vmem:[%s2907_s3] sm:$0xff]  ;;  %v2729_v31 = vld [vmem:[%s2907_s3 + $0x8] sm:$0xff]  ;;  %v2734_v32 = vld [vmem:[%s2907_s3 + $0x10] sm:$0xff]  ;;  %s2745_s10 = smov 0  }
 0x27d   : > { %v2739_v33 = vld [vmem:[%s2907_s3 + $0x18] sm:$0xff]  ;;  %v1068_v34 = vld [vmem:[#allocation2] sm:$0xff]   ;;  %v1069_v35 = vld [vmem:[#allocation3] sm:$0xff]  }
 0x27e LB: >> { %v2754_v36 = vpack.c.bf16 %v2729_v31, %v2724_v30  ;;  %v2529_v37 = vmov 0.0|0.0   ;;  %v2761_v38 = vpack.c.bf16 %v2739_v33, %v2734_v32  ;;  %vm2530_vm4 = vmmov 0   ;;  %s2107_s11 = sshll.u32 %s2525_s10, 6  ;;  %s2532_s14 = smov 64   ;;  %s2525_s10 = sphi %s2745_s10, %s1075_s10   ;;  %v2521_v34 = vphi %v1068_v34, %v2913_v34   ;;  %v2517_v35 = vphi %v1069_v35, %v2912_v35  }
 0x27f   : >> { %2341 = vmatprep.subr.bf16.mxu0 %v2529_v37  ;;  %2347 = vmatprep.subr.bf16.mxu1 %v2529_v37  ;;  %v2531_v39 = vmov 0.0   ;;  %vm1089_vm5 = vcmask 261120   ;;  %s2784_s13 = scalar_lea.vmem [#allocation4], %s2107_s11  ;;  %s2533_s15 = smov 32  }
 0x280   : >> { %2343 = vmatpush3.bf16.msra.mxu0 %v2754_v36  ;;  %2253 = vmatprep.mubr.msk.f32.mxu0 %vm2530_vm4, %v2531_v39  ;;  %s2795_s16 = scalar_lea.vmem %s2595_s12, %s2107_s11  ;;  %s2534_s17 = smov 96  }
 0x281   : >> { %2344 = vmatprep.subr.bf16.mxu0 %v2529_v37  ;;  %2349 = vmatpush3.bf16.msra.mxu1 %v2754_v36  ;;  %s1075_s10 = sadd.s32 1, %s2525_s10  }
 0x282   : >> { %2350 = vmatprep.subr.bf16.mxu1 %v2529_v37  ;;  %2264 = vmatprep.mubr.msk.f32.mxu1 %vm2530_vm4, %v2531_v39  ;;  %v1081_v40 = vld [vmem:[%s2784_s13] sm:$0xff]  ;;  %v1082_v60 = vld [vmem:[%s2784_s13 + $0x8] sm:$0xff]  ;;  %v1083_v13 = vld [vmem:[%s2784_s13 + $0x10] sm:$0xff]  ;;  %p1072_p6 = scmp.ge.s32.totalorder %s1075_s10, 4  }
 0x283   : > { %p2104_p7 = scmp.ne.s32.totalorder (%p1072_p6), %s2581_s25, 1 }
 0x284   : >> { %2346 = vmatpush3.bf16.msra.mxu0 %v2761_v38 }
 0x285   : >> { %2352 = vmatpush3.bf16.msra.mxu1 %v2761_v38  ;;  %2353 = vmatprep.subr.bf16.mxu0 %v2529_v37 }
 0x286   : >> { %2359 = vmatprep.subr.bf16.mxu1 %v2529_v37 }
 0x287   : >> { %2254 = vmatmul.mubr.msk.f32.vlgmr.msra.gmra.mrb[0].mxu0 %vm1089_vm5, %v2521_v34 }
 0x288   : >> { %2355 = vmatpush3.bf16.msra.mxu0 %v2754_v36  ;;  %2275 = vmatprep.mubr.msk.f32.mxu0 %vm2530_vm4, %v2531_v39 }
 0x289   : >> { %2356 = vmatprep.subr.bf16.mxu0 %v2529_v37 }
 0x28c   : >> { %2358 = vmatpush3.bf16.msra.mxu0 %v2761_v38 }
 0x28d   : >> { %2365 = vmatprep.subr.bf16.mxu0 %v2529_v37 }
 0x35a   : >> { %v1159_v41 = vpop.f32.mrb[0].mxu0 }
 0x35b   : >> { %v1163_v42 = vadd.f32 %v1159_v41, %v1081_v40  ;;  %v2255_v43 = vpop.f32.mrb[1].mxu0 }
 0x35d   : >> { %2431 = vtanh.f32 %v1163_v42  ;;  %v2089_v45 = vmul.f32 -1.442695, %v1163_v42 }
 0x35f   : >> { %2433 = vpow2.f32 %v2089_v45 }
 0x367   : >> { %v2432_v44 = vpop.eup %2431 }
 0x368   : >> { %1177 = vrot.lane.b32.xlu0 %v2432_v44, %s2532_s14 }
 0x369   : >> { %v2434_v46 = vpop.eup %2433 }
 0x36a   : >> { %v1167_v47 = vadd.f32 1.0, %v2434_v46 }
 0x36c   : >> { %1172 = vrot.lane.b32.xlu0 %v2517_v35, %s2533_s15  ;;  %2435 = vrcp.f32 %v1167_v47  ;;  %v1084_v35 = vld [vmem:[%s2784_s13 + $0x18] sm:$0xff] }
 0x376   : >> { %v2436_v48 = vpop.eup %2435 }
 0x3da   : >> { %v1178_v49 = vpop.permute.xlu0 %1177 }
 0x3db   : >> { %v1180_v50 = vmul.f32 %v2436_v48, %v1178_v49 }
 0x3dd   : >> { %1182 = vrot.lane.b32.xlu1 %v1180_v50, %s2533_s15 }
 0x3de   : >> { %v1173_v51 = vpop.permute.xlu0 %1172 }
 0x3df   : >> { %v1175_v52 = vmul.f32 %v2436_v48, %v1173_v51 }
 0x44f   : >> { %v1183_v53 = vpop.permute.xlu1 %1182 }
 0x450   : >> { %v1185_v54 = vadd.f32 %v1183_v53, %v1175_v52 }
 0x452   : >> { %2437 = vtanh.f32 %v1185_v54 }
 0x45c   : >> { %v2438_v55 = vpop.eup %2437 }
 0x45d   : >> { %1188 = vrot.lane.b32.xlu1 %v2438_v55, %s2532_s14 }
 0x4cf   : >> { %v1189_v56 = vpop.permute.xlu1 %1188 }
 0x4d0   : >> { %v1191_v57 = vmul.f32 %v2436_v48, %v1189_v56 }
 0x4d2   : >> { %1193 = vrot.lane.b32.xlu0 %v1191_v57, %s2533_s15  ;;  %v1085_v57 = vld [vmem:[%s2784_s13 + $0x20] sm:$0xff] }
 0x544   : >> { %v1194_v58 = vpop.permute.xlu0 %1193 }
 0x545   : >> { %1904 = vst.msk [vmem:[%s2795_s16] sm:$0xff] %vm1089_vm5, %v1194_v58  ;;  %2265 = vmatmul.mubr.msk.f32.vlgmr.msra.gmra.mrb[0].mxu1 %vm1089_vm5, %v1194_v58 }
 0x546   : >> { %2361 = vmatpush3.bf16.msra.mxu1 %v2754_v36  ;;  %2286 = vmatprep.mubr.msk.f32.mxu1 %vm2530_vm4, %v2531_v39 }
 0x547   : >> { %2362 = vmatprep.subr.bf16.mxu1 %v2529_v37 }
 0x54a   : >> { %2364 = vmatpush3.bf16.msra.mxu1 %v2761_v38 }
 0x54b   : >> { %2371 = vmatprep.subr.bf16.mxu1 %v2529_v37 }
 0x618   : >> { %v1263_v61 = vpop.f32.mrb[0].mxu1 }
 0x619   : >> { %v1267_v63 = vadd.f32 %v1263_v61, %v1082_v60  ;;  %v2266_v0 = vpop.f32.mrb[1].mxu1 }
 0x61b   : >> { %2439 = vtanh.f32 %v1267_v63  ;;  %v2091_v2 = vmul.f32 -1.442695, %v1267_v63 }
 0x61d   : >> { %2441 = vpow2.f32 %v2091_v2 }
 0x625   : >> { %v2440_v1 = vpop.eup %2439 }
 0x626   : >> { %1277 = vrot.lane.b32.xlu1 %v2440_v1, %s2532_s14 }
 0x627   : >> { %v2442_v3 = vpop.eup %2441 }
 0x628   : >> { %v1271_v4 = vadd.f32 1.0, %v2442_v3 }
 0x62a   : >> { %2443 = vrcp.f32 %v1271_v4 }
 0x634   : >> { %v2444_v59 = vpop.eup %2443 }
 0x635   : >> { %v1275_v6 = vmul.f32 %v2444_v59, %v1185_v54 }
 0x698   : >> { %v1278_v5 = vpop.permute.xlu1 %1277 }
 0x699   : >> { %v1280_v62 = vmul.f32 %v2444_v59, %v1278_v5 }
 0x69b   : >> { %1282 = vrot.lane.b32.xlu0 %v1280_v62, %s2533_s15 }
 0x70d   : >> { %v1283_v7 = vpop.permute.xlu0 %1282 }
 0x70e   : >> { %v1285_v8 = vadd.f32 %v1283_v7, %v1275_v6 }
 0x710   : >> { %2445 = vtanh.f32 %v1285_v8 }
 0x71a   : >> { %v2446_v9 = vpop.eup %2445 }
 0x71b   : >> { %1288 = vrot.lane.b32.xlu1 %v2446_v9, %s2532_s14 }
 0x78d   : >> { %v1289_v10 = vpop.permute.xlu1 %1288 }
 0x78e   : >> { %v1291_v11 = vmul.f32 %v2444_v59, %v1289_v10 }
 0x790   : >> { %1293 = vrot.lane.b32.xlu0 %v1291_v11, %s2533_s15  ;;  %v1086_v11 = vld [vmem:[%s2784_s13 + $0x28] sm:$0xff] }
 0x802   : >> { %v1294_v12 = vpop.permute.xlu0 %1293 }
 0x803   : >> { %1905 = vst.msk [vmem:[%s2795_s16 + $0x8] sm:$0xff] %vm1089_vm5, %v1294_v12  ;;  %2276 = vmatmul.mubr.msk.f32.vlgmr.msra.gmra.mrb[2].mxu0 %vm1089_vm5, %v1294_v12 }
 0x804   : >> { %2367 = vmatpush3.bf16.msra.mxu0 %v2754_v36  ;;  %2297 = vmatprep.mubr.msk.f32.mxu0 %vm2530_vm4, %v2531_v39 }
 0x805   : >> { %2368 = vmatprep.subr.bf16.mxu0 %v2529_v37 }
 0x808   : >> { %2370 = vmatpush3.bf16.msra.mxu0 %v2761_v38 }
 0x809   : >> { %2377 = vmatprep.subr.bf16.mxu0 %v2529_v37 }
 0x8d6   : >> { %v1363_v14 = vpop.f32.mrb[2].mxu0 }
 0x8d7   : >> { %v1367_v15 = vadd.f32 %v1363_v14, %v1083_v13  ;;  %v2277_v16 = vpop.f32.mrb[3].mxu0 }
 0x8d9   : >> { %2447 = vtanh.f32 %v1367_v15  ;;  %v2093_v18 = vmul.f32 -1.442695, %v1367_v15 }
 0x8db   : >> { %2449 = vpow2.f32 %v2093_v18 }
 0x8e3   : >> { %v2448_v17 = vpop.eup %2447 }
 0x8e4   : >> { %1377 = vrot.lane.b32.xlu1 %v2448_v17, %s2532_s14 }
 0x8e5   : >> { %v2450_v19 = vpop.eup %2449 }
 0x8e6   : >> { %v1371_v20 = vadd.f32 1.0, %v2450_v19 }
 0x8e8   : >> { %2451 = vrcp.f32 %v1371_v20 }
 0x8f2   : >> { %v2452_v21 = vpop.eup %2451 }
 0x8f3   : >> { %v1375_v24 = vmul.f32 %v2452_v21, %v1285_v8 }
 0x956   : >> { %v1378_v22 = vpop.permute.xlu1 %1377 }
 0x957   : >> { %v1380_v23 = vmul.f32 %v2452_v21, %v1378_v22 }
 0x959   : >> { %1382 = vrot.lane.b32.xlu0 %v1380_v23, %s2533_s15 }
 0x9cb   : >> { %v1383_v25 = vpop.permute.xlu0 %1382 }
 0x9cc   : >> { %v1385_v26 = vadd.f32 %v1383_v25, %v1375_v24  ;;  %v1087_v25 = vld [vmem:[%s2784_s13 + $0x30] sm:$0xff] }
 0x9ce   : >> { %2453 = vtanh.f32 %v1385_v26 }
 0x9d8   : >> { %v2454_v27 = vpop.eup %2453 }
 0x9d9   : >> { %1388 = vrot.lane.b32.xlu1 %v2454_v27, %s2532_s14 }
 0xa4b   : >> { %v1389_v28 = vpop.permute.xlu1 %1388 }
 0xa4c   : >> { %v1391_v29 = vmul.f32 %v2452_v21, %v1389_v28 }
 0xa4e   : >> { %1393 = vrot.lane.b32.xlu0 %v1391_v29, %s2533_s15 }
 0xac0   : >> { %v1394_v34 = vpop.permute.xlu0 %1393 }
 0xac1   : >> { %1906 = vst.msk [vmem:[%s2795_s16 + $0x10] sm:$0xff] %vm1089_vm5, %v1394_v34  ;;  %2287 = vmatmul.mubr.msk.f32.vlgmr.msra.gmra.mrb[2].mxu1 %vm1089_vm5, %v1394_v34 }
 0xac2   : >> { %2373 = vmatpush3.bf16.msra.mxu1 %v2754_v36  ;;  %2308 = vmatprep.mubr.msk.f32.mxu1 %vm2530_vm4, %v2531_v39 }
 0xac3   : >> { %2374 = vmatprep.subr.bf16.mxu1 %v2529_v37 }
 0xac6   : >> { %2376 = vmatpush3.bf16.msra.mxu1 %v2761_v38 }
 0xac7   : >> { %2383 = vmatprep.subr.bf16.mxu1 %v2529_v37 }
 0xb94   : >> { %v1463_v40 = vpop.f32.mrb[2].mxu1 }
 0xb95   : >> { %v1467_v41 = vadd.f32 %v1463_v40, %v1084_v35  ;;  %v2288_v42 = vpop.f32.mrb[3].mxu1 }
 0xb97   : >> { %2455 = vtanh.f32 %v1467_v41  ;;  %v2095_v44 = vmul.f32 -1.442695, %v1467_v41 }
 0xb99   : >> { %2457 = vpow2.f32 %v2095_v44 }
 0xba1   : >> { %v2456_v43 = vpop.eup %2455 }
 0xba2   : >> { %1477 = vrot.lane.b32.xlu1 %v2456_v43, %s2532_s14 }
 0xba3   : >> { %v2458_v45 = vpop.eup %2457 }
 0xba4   : >> { %v1471_v46 = vadd.f32 1.0, %v2458_v45 }
 0xba6   : >> { %2459 = vrcp.f32 %v1471_v46 }
 0xbb0   : >> { %v2460_v47 = vpop.eup %2459 }
 0xbb1   : >> { %v1475_v50 = vmul.f32 %v2460_v47, %v1385_v26 }
 0xc14   : >> { %v1478_v48 = vpop.permute.xlu1 %1477 }
 0xc15   : >> { %v1480_v49 = vmul.f32 %v2460_v47, %v1478_v48 }
 0xc17   : >> { %1482 = vrot.lane.b32.xlu0 %v1480_v49, %s2533_s15 }
 0xc89   : >> { %v1483_v51 = vpop.permute.xlu0 %1482 }
 0xc8a   : >> { %v1485_v52 = vadd.f32 %v1483_v51, %v1475_v50  ;;  %v1088_v51 = vld [vmem:[%s2784_s13 + $0x38] sm:$0xff] }
 0xc8c   : >> { %2461 = vtanh.f32 %v1485_v52 }
 0xc96   : >> { %v2462_v53 = vpop.eup %2461 }
 0xc97   : >> { %1488 = vrot.lane.b32.xlu1 %v2462_v53, %s2532_s14 }
 0xd09   : >> { %v1489_v54 = vpop.permute.xlu1 %1488 }
 0xd0a   : >> { %v1491_v55 = vmul.f32 %v2460_v47, %v1489_v54 }
 0xd0c   : >> { %1493 = vrot.lane.b32.xlu0 %v1491_v55, %s2533_s15 }
 0xd7e   : >> { %v1494_v56 = vpop.permute.xlu0 %1493 }
 0xd7f   : >> { %1907 = vst.msk [vmem:[%s2795_s16 + $0x18] sm:$0xff] %vm1089_vm5, %v1494_v56  ;;  %2298 = vmatmul.mubr.msk.f32.vlgmr.msra.gmra.mrb[4].mxu0 %vm1089_vm5, %v1494_v56 }
 0xd80   : >> { %2379 = vmatpush3.bf16.msra.mxu0 %v2754_v36  ;;  %2319 = vmatprep.mubr.msk.f32.mxu0 %vm2530_vm4, %v2531_v39 }
 0xd81   : >> { %2380 = vmatprep.subr.bf16.mxu0 %v2529_v37 }
 0xd84   : >> { %2382 = vmatpush3.bf16.msra.mxu0 %v2761_v38 }
 0xe52   : >> { %v1563_v58 = vpop.f32.mrb[4].mxu0 }
 0xe53   : >> { %v1567_v60 = vadd.f32 %v1563_v58, %v1085_v57  ;;  %v2299_v61 = vpop.f32.mrb[5].mxu0 }
 0xe55   : >> { %2463 = vtanh.f32 %v1567_v60  ;;  %v2097_v0 = vmul.f32 -1.442695, %v1567_v60 }
 0xe57   : >> { %2465 = vpow2.f32 %v2097_v0 }
 0xe5f   : >> { %v2464_v63 = vpop.eup %2463 }
 0xe60   : >> { %1577 = vrot.lane.b32.xlu1 %v2464_v63, %s2532_s14 }
 0xe61   : >> { %v2466_v1 = vpop.eup %2465 }
 0xe62   : >> { %v1571_v2 = vadd.f32 1.0, %v2466_v1 }
 0xe64   : >> { %2467 = vrcp.f32 %v1571_v2 }
 0xe6e   : >> { %v2468_v3 = vpop.eup %2467 }
 0xe6f   : >> { %v1575_v5 = vmul.f32 %v2468_v3, %v1485_v52 }
 0xed2   : >> { %v1578_v4 = vpop.permute.xlu1 %1577 }
 0xed3   : >> { %v1580_v59 = vmul.f32 %v2468_v3, %v1578_v4 }
 0xed5   : >> { %1582 = vrot.lane.b32.xlu0 %v1580_v59, %s2533_s15 }
 0xf47   : >> { %v1583_v62 = vpop.permute.xlu0 %1582 }
 0xf48   : >> { %v1585_v6 = vadd.f32 %v1583_v62, %v1575_v5 }
 0xf4a   : >> { %2469 = vtanh.f32 %v1585_v6 }
 0xf54   : >> { %v2470_v7 = vpop.eup %2469 }
 0xf55   : >> { %1588 = vrot.lane.b32.xlu1 %v2470_v7, %s2532_s14 }
 0xfc7   : >> { %v1589_v8 = vpop.permute.xlu1 %1588 }
 0xfc8   : >> { %v1591_v9 = vmul.f32 %v2468_v3, %v1589_v8 }
 0xfca   : >> { %1593 = vrot.lane.b32.xlu0 %v1591_v9, %s2533_s15 }
0x103c   : >> { %v1594_v10 = vpop.permute.xlu0 %1593 }
0x103d   : >> { %1908 = vst.msk [vmem:[%s2795_s16 + $0x20] sm:$0xff] %vm1089_vm5, %v1594_v10  ;;  %2309 = vmatmul.mubr.msk.f32.vlgmr.msra.gmra.mrb[4].mxu1 %vm1089_vm5, %v1594_v10 }
0x103e   : >> { %2385 = vmatpush3.bf16.msra.mxu1 %v2754_v36  ;;  %2330 = vmatprep.mubr.msk.f32.mxu1 %vm2530_vm4, %v2531_v39 }
0x103f   : >> { %2386 = vmatprep.subr.bf16.mxu1 %v2529_v37 }
0x1042   : >> { %2388 = vmatpush3.bf16.msra.mxu1 %v2761_v38 }
0x1110   : >> { %v1663_v12 = vpop.f32.mrb[4].mxu1 }
0x1111   : >> { %v1667_v13 = vadd.f32 %v1663_v12, %v1086_v11  ;;  %v2310_v14 = vpop.f32.mrb[5].mxu1 }
0x1113   : >> { %2471 = vtanh.f32 %v1667_v13  ;;  %v2099_v16 = vmul.f32 -1.442695, %v1667_v13 }
0x1115   : >> { %2473 = vpow2.f32 %v2099_v16 }
0x111d   : >> { %v2472_v15 = vpop.eup %2471 }
0x111e   : >> { %1677 = vrot.lane.b32.xlu1 %v2472_v15, %s2532_s14 }
0x111f   : >> { %v2474_v17 = vpop.eup %2473 }
0x1120   : >> { %v1671_v18 = vadd.f32 1.0, %v2474_v17 }
0x1122   : >> { %2475 = vrcp.f32 %v1671_v18 }
0x112c   : >> { %v2476_v36 = vpop.eup %2475 }
0x112d   : >> { %v1675_v38 = vmul.f32 %v2476_v36, %v1585_v6 }
0x1190   : >> { %v1678_v39 = vpop.permute.xlu1 %1677 }
0x1191   : >> { %v1680_v37 = vmul.f32 %v2476_v36, %v1678_v39 }
0x1193   : >> { %1682 = vrot.lane.b32.xlu0 %v1680_v37, %s2533_s15 }
0x1205   : >> { %v1683_v19 = vpop.permute.xlu0 %1682 }
0x1206   : >> { %v1685_v20 = vadd.f32 %v1683_v19, %v1675_v38 }
0x1208   : >> { %2477 = vtanh.f32 %v1685_v20 }
0x1212   : >> { %v2478_v21 = vpop.eup %2477 }
0x1213   : >> { %1688 = vrot.lane.b32.xlu1 %v2478_v21, %s2532_s14 }
0x1285   : >> { %v1689_v22 = vpop.permute.xlu1 %1688 }
0x1286   : >> { %v1691_v23 = vmul.f32 %v2476_v36, %v1689_v22 }
0x1288   : >> { %1693 = vrot.lane.b32.xlu0 %v1691_v23, %s2533_s15 }
0x12fa   : >> { %v1694_v24 = vpop.permute.xlu0 %1693 }
0x12fb   : >> { %1909 = vst.msk [vmem:[%s2795_s16 + $0x28] sm:$0xff] %vm1089_vm5, %v1694_v24  ;;  %2320 = vmatmul.mubr.msk.f32.vlgmr.msra.gmra.mrb[6].mxu0 %vm1089_vm5, %v1694_v24 }
0x13ce   : >> { %v1763_v26 = vpop.f32.mrb[6].mxu0 }
0x13cf   : >> { %v1767_v27 = vadd.f32 %v1763_v26, %v1087_v25  ;;  %v2321_v28 = vpop.f32.mrb[7].mxu0 }
0x13d1   : >> { %2479 = vtanh.f32 %v1767_v27  ;;  %v2101_v34 = vmul.f32 -1.442695, %v1767_v27 }
0x13d3   : >> { %2481 = vpow2.f32 %v2101_v34 }
0x13db   : >> { %v2480_v29 = vpop.eup %2479 }
0x13dc   : >> { %1777 = vrot.lane.b32.xlu1 %v2480_v29, %s2532_s14 }
0x13dd   : >> { %v2482_v35 = vpop.eup %2481 }
0x13de   : >> { %v1771_v40 = vadd.f32 1.0, %v2482_v35 }
0x13e0   : >> { %2483 = vrcp.f32 %v1771_v40 }
0x13ea   : >> { %v2484_v41 = vpop.eup %2483 }
0x13eb   : >> { %v1775_v44 = vmul.f32 %v2484_v41, %v1685_v20 }
0x144e   : >> { %v1778_v42 = vpop.permute.xlu1 %1777 }
0x144f   : >> { %v1780_v43 = vmul.f32 %v2484_v41, %v1778_v42 }
0x1451   : >> { %1782 = vrot.lane.b32.xlu0 %v1780_v43, %s2533_s15 }
0x14c3   : >> { %v1783_v45 = vpop.permute.xlu0 %1782 }
0x14c4   : >> { %v1785_v46 = vadd.f32 %v1783_v45, %v1775_v44 }
0x14c6   : >> { %2485 = vtanh.f32 %v1785_v46 }
0x14d0   : >> { %v2486_v47 = vpop.eup %2485 }
0x14d1   : >> { %1788 = vrot.lane.b32.xlu1 %v2486_v47, %s2532_s14 }
0x1543   : >> { %v1789_v48 = vpop.permute.xlu1 %1788 }
0x1544   : >> { %v1791_v49 = vmul.f32 %v2484_v41, %v1789_v48 }
0x1546   : >> { %1793 = vrot.lane.b32.xlu0 %v1791_v49, %s2533_s15 }
0x15b8   : >> { %v1794_v50 = vpop.permute.xlu0 %1793 }
0x15b9   : >> { %1910 = vst.msk [vmem:[%s2795_s16 + $0x30] sm:$0xff] %vm1089_vm5, %v1794_v50  ;;  %2331 = vmatmul.mubr.msk.f32.vlgmr.msra.gmra.mrb[6].mxu1 %vm1089_vm5, %v1794_v50 }
0x168c   : >> { %v1863_v52 = vpop.f32.mrb[6].mxu1 }
0x168d   : >> { %v1867_v53 = vadd.f32 %v1863_v52, %v1088_v51  ;;  %v2332_v54 = vpop.f32.mrb[7].mxu1 }
0x168f   : >> { %2487 = vtanh.f32 %v1867_v53  ;;  %v2103_v56 = vmul.f32 -1.442695, %v1867_v53 }
0x1691   : >> { %2489 = vpow2.f32 %v2103_v56 }
0x1699   : >> { %v2488_v55 = vpop.eup %2487 }
0x169a   : >> { %1877 = vrot.lane.b32.xlu1 %v2488_v55, %s2532_s14 }
0x169b   : >> { %v2490_v57 = vpop.eup %2489 }
0x169c   : >> { %v1871_v58 = vadd.f32 1.0, %v2490_v57 }
0x169e   : >> { %2491 = vrcp.f32 %v1871_v58 }
0x16a8   : >> { %v2492_v60 = vpop.eup %2491 }
0x16a9   : >> { %v1875_v0 = vmul.f32 %v2492_v60, %v1785_v46 }
0x170c   : >> { %v1878_v61 = vpop.permute.xlu1 %1877 }
0x170d   : >> { %v1880_v63 = vmul.f32 %v2492_v60, %v1878_v61 }
0x170f   : >> { %1882 = vrot.lane.b32.xlu0 %v1880_v63, %s2533_s15 }
0x1781   : >> { %v1883_v1 = vpop.permute.xlu0 %1882 }
0x1782   : >> { %v1885_v2 = vadd.f32 %v1883_v1, %v1875_v0 }
0x1784   : >> { %2493 = vtanh.f32 %v1885_v2 }
0x178e   : >> { %v2494_v3 = vpop.eup %2493 }
0x178f   : >> { %1888 = vrot.lane.b32.xlu1 %v2494_v3, %s2532_s14 }
0x1793   : >> { %1913 = vrot.lane.b32.xlu1 %v1885_v2, %s2534_s17 }
0x1801   : >> { %v1889_v4 = vpop.permute.xlu1 %1888 }
0x1802   : >> { %v1891_v59 = vmul.f32 %v2492_v60, %v1889_v4 }
0x1804   : >> { %1893 = vrot.lane.b32.xlu0 %v1891_v59, %s2533_s15 }
0x1805   : >> { %v1914_v5 = vpop.permute.xlu1 %1913  }
0x1806   : >> { %v2912_v35 = vmov %v1914_v5  ;;  %1918 = vst.msk [vmem:[#allocation3] sm:$0xff] (%p1072_p6), %vm1089_vm5, %v1914_v5 }
0x1871   : > { %1074 = sbr.rel (!%p1072_p6) target bundleno = 638 (0x27e), region = 107 }
0x1876   : >> { %v1894_v62 = vpop.permute.xlu0 %1893  }
0x1877   : >> { %1911 = vst.msk [vmem:[%s2795_s16 + $0x38] sm:$0xff] %vm1089_vm5, %v1894_v62  ;;  %v2913_v34 = vmov %v1894_v62  ;;  %1917 = vst.msk [vmem:[#allocation2] sm:$0xff] (%p1072_p6), %vm1089_vm5, %v1894_v62 }
0x1878   : > { %1922 = sbr.rel (%p2104_p7) target bundleno = 6271 (0x187f), region = 59  ;;  %1923 = vst.msk [vmem:[%s2910_s6] sm:$0xff] (!%p2104_p7), %vm1089_vm5, %v1894_v62  ;;  %1924 = vst.msk [vmem:[%s2911_s7] sm:$0xff] (!%p2104_p7), %vm1089_vm5, %v1914_v5 }
0x187f PF: > { %s18_s24 = sadd.s32 1, %s2513_s24  }
0x1880   : > { %p15_p8 = scmp.ge.s32.totalorder %s18_s24, 4  }
0x1882   :  { %17 = sbr.rel (!%p15_p8) target bundleno = 1 (0x1), region = 118 }

</bundles_post_ra>
